<compile_context>
chip_gen: v5e
topology: v5e:2x2
jax: 0.10.0
libtpu: 0.0.40
codegen_flags: <defaults>
</compile_context>

<pallas_src>
from functools import partial

import jax
import jax.numpy as jnp
from jax.experimental import pallas as pl
from jax.experimental.pallas import tpu as pltpu


def _round_up(x, m):
    return (x + m - 1) // m * m


def _vmem_limit_bytes():
    """Scoped-VMEM limit derived from the actual part (v7x: 64 MiB/TC)."""
    cap = 64 * 1024 * 1024                     # conservative default (v7x per TC)
    try:
        cap = int(pltpu.get_tpu_info().vmem_capacity_bytes)
    except Exception:
        pass
    return max(32 * 1024 * 1024, min(int(cap * 0.7), 100 * 1024 * 1024))


def _pick_tile_h(Ho, Wo, K, Cout, Hp, Wp, Cin, stride, KH, itemsize, budget_bytes):
    """Largest divisor of Ho whose row tile fits the VMEM budget.

    The budget counts the double-buffered resident input image, the weights,
    the double-buffered bf16 output tile, the f32 accumulator and the im2col
    patch value (all with their (8,128) lane padding).
    """
    lane = 128
    k_l = _round_up(K, lane)
    c_l = _round_up(Cout, lane)
    cin_l = _round_up(Cin, lane)
    fixed = (2 * Hp * Wp * cin_l * itemsize          # double-buffered resident image
             + 2 * _round_up(K, 8) * c_l * itemsize  # double-buffered weights
             + KH * Wp * cin_l * itemsize            # input-window halo rows
             + 128 * 1024)                           # bias / stats tiles + slack
    per_th = (Wo * (2 * 2 * c_l                      # double-buffered bf16 y tile
                    + 4 * c_l                        # f32 accumulator
                    + 2 * 2 * k_l * itemsize)        # patch value + tap temporaries
              + stride * Wp * cin_l * itemsize)      # loaded input-window rows
    avail = max(budget_bytes - fixed, 0)
    best = None
    for th in range(1, Ho + 1):
        if Ho % th:
            continue
        if (th * Wo) % 8:
            continue                                 # keep second-minor dim 8-aligned
        if th * per_th <= avail:
            best = th
    if best is None:
        # TODO(synk): no (8,)-aligned divisor tile fits the budget; fall back to
        # one tile per image (still a legal block: it spans the full Ho*Wo
        # extent of its axis) and rely on vmem_limit_bytes headroom.
        best = Ho
    return best


def _pick_rows(R, C, in_itemsize, budget_bytes):
    """Large Stage-B row block: divisor of R, multiple of 8, under a VMEM cap."""
    lane_c = _round_up(C, 128)
    per_row = lane_c * (2 * in_itemsize + 2 * 4)     # dbuf input + dbuf f32 output
    cap = max(8, min(R, budget_bytes // per_row, 8192))
    start = int(cap) - int(cap) % 8
    for r in range(start, 7, -8):
        if R % r == 0:
            return r
    return R                                          # single full-extent block


def _conv_im2col_kernel(x_ref, w_ref, b_ref, y_ref, st_ref, *,
                        KH, KW, stride, TH, Wo, add_bias):
    # x_ref:  (Hp, Wp, Cin)  padded NHWC image of the current batch element;
    #                        VMEM-resident across the h axis, halo via pl.ds.
    # w_ref:  (K, Cout)      folded weights ((kh,kw,cin) -> cout), compute dtype
    # b_ref:  (1, Cout)      conv bias, f32 (used only when add_bias)
    # y_ref:  (TM, Cout)     conv output tile (bf16 when BN follows)
    # st_ref: (2, Cout)      BN partials: row0 = tile mean, row1 = tile M2
    h = pl.program_id(1)
    Cin = x_ref.shape[-1]
    TM = TH * Wo

    th_in = (TH - 1) * stride + KH
    base = pl.multiple_of(h * (TH * stride), TH * stride)
    xwin = x_ref[pl.ds(base, th_in), :, :]            # (th_in, Wp, Cin)

    # im2col as a VALUE: one strided slice per tap, concatenated on the channel
    # axis -> (TH, Wo, K) -> (TM, K).  No VMEM scratch round-trip.
    pieces = []
    for kh in range(KH):
        for kw in range(KW):
            pieces.append(jax.lax.slice(
                xwin,
                (kh, kw, 0),
                (kh + (TH - 1) * stride + 1, kw + (Wo - 1) * stride + 1, Cin),
                (stride, stride, 1)))                 # (TH, Wo, Cin)
    patch = jnp.concatenate(pieces, axis=-1).reshape(TM, KH * KW * Cin)

    # Single MXU matmul; bf16 operands, f32 accumulation.  K and Cout need no
    # explicit 128 padding — Mosaic pads the MXU fill internally.
    acc = jnp.dot(patch, w_ref[...], preferred_element_type=jnp.float32)
    if add_bias:                                      # folded out when BN follows
        acc = acc + b_ref[...]
    y_ref[...] = acc.astype(y_ref.dtype)

    # Per-tile BN partials (two-pass: tile mean, then squared deviations).
    tmean = jnp.mean(acc, axis=0, keepdims=True)      # (1, Cout)
    d = acc - tmean
    tm2 = jnp.sum(d * d, axis=0, keepdims=True)       # (1, Cout)
    st_ref[...] = jnp.concatenate([tmean, tm2], axis=0)   # one full-block store


def _bn_relu_kernel(y_ref, scale_ref, shift_ref, o_ref, *, has_relu):
    v = y_ref[...].astype(jnp.float32) * scale_ref[...] + shift_ref[...]
    if has_relu:
        v = jnp.maximum(v, 0.0)
    o_ref[...] = v.astype(o_ref.dtype)


def conv_bn_relu_forward(x_nchw, weight, conv_bias, gamma, beta, *,
                         stride, padding, has_bn=True, has_relu=True,
                         eps=1e-5, compute_dtype=jnp.bfloat16):
    """x_nchw: (N, Cin, H, W); weight: (Cout, Cin, KH, KW) — PyTorch conventions."""
    # TODO(synk): grouped convolution (groups > 1) is not implemented.
    N, Cin, H, W = x_nchw.shape
    Cout, Cin_w, KH, KW = weight.shape
    assert Cin_w == Cin, "groups != 1 not supported"

    Hp, Wp = H + 2 * padding, W + 2 * padding
    Ho = (Hp - KH) // stride + 1
    Wo = (Wp - KW) // stride + 1
    K = KH * KW * Cin
    R = N * Ho * Wo

    # ---- one-time layout prep (outside the kernel hot path) ----
    # TODO(synk): accept/emit NHWC end-to-end and fold the spatial pad into the
    # kernel to remove these activation passes when layers are chained.
    x = jnp.transpose(x_nchw, (0, 2, 3, 1))
    x = jnp.pad(x, ((0, 0), (padding, padding), (padding, padding), (0, 0)))
    x = x.astype(compute_dtype)
    w = jnp.transpose(weight, (2, 3, 1, 0)).reshape(K, Cout).astype(compute_dtype)
    b = conv_bias.astype(jnp.float32).reshape(1, Cout)

    itemsize = jnp.dtype(compute_dtype).itemsize
    vmem_limit = _vmem_limit_bytes()
    TH = _pick_tile_h(Ho, Wo, K, Cout, Hp, Wp, Cin, stride, KH, itemsize,
                      int(vmem_limit * 0.85))
    num_h = Ho // TH
    TM = TH * Wo
    T = N * num_h

    inter_dtype = jnp.bfloat16 if has_bn else jnp.float32
    add_bias = not has_bn                  # bias cancels exactly under train-mode BN

    # ---- stage A: conv (im2col + one matmul) + per-tile BN partials ----
    # TODO(synk): for very large Hp*Wp*Cin on 64 MiB-VMEM v7x, block the input
    # on h (overlapping window / manual DMA) instead of keeping it resident.
    kern_a = partial(_conv_im2col_kernel, KH=KH, KW=KW, stride=stride,
                     TH=TH, Wo=Wo, add_bias=add_bias)
    grid_a = pltpu.PrefetchScalarGridSpec(
        num_scalar_prefetch=0,
        grid=(N, num_h),
        in_specs=[
            # full padded image; block index only depends on n -> stays resident
            pl.BlockSpec((None, Hp, Wp, Cin), lambda n, h: (n, 0, 0, 0)),
            pl.BlockSpec((K, Cout), lambda n, h: (0, 0)),
            pl.BlockSpec((1, Cout), lambda n, h: (0, 0)),
        ],
        out_specs=[
            pl.BlockSpec((None, TM, Cout), lambda n, h: (n, h, 0)),
            pl.BlockSpec((None, None, 2, Cout), lambda n, h: (n, h, 0, 0)),
        ],
    )
    y3d, stats = pl.pallas_call(
        kern_a,
        out_shape=(jax.ShapeDtypeStruct((N, Ho * Wo, Cout), inter_dtype),
                   jax.ShapeDtypeStruct((N, num_h, 2, Cout), jnp.float32)),
        grid_spec=grid_a,
        compiler_params=pltpu.CompilerParams(
            dimension_semantics=("parallel", "parallel"),
            vmem_limit_bytes=vmem_limit),
    )(x, w, b)

    # ---- per-channel affine from the tile partials (tiny (Cout,) XLA ops) ----
    # Valid because every tile holds exactly TM rows (exact divisor tiling).
    if has_bn:
        tile_mean = stats[:, :, 0, :].reshape(T, Cout)
        tile_m2 = stats[:, :, 1, :].reshape(T, Cout)
        mean = jnp.mean(tile_mean, axis=0)
        m2 = jnp.sum(tile_m2, axis=0) + TM * jnp.sum((tile_mean - mean) ** 2, axis=0)
        var = m2 / R                                   # biased var (BN fwd)
        inv_std = jax.lax.rsqrt(var + eps)
        scale = gamma.astype(jnp.float32) * inv_std
        shift = beta.astype(jnp.float32) - mean * scale
    else:
        scale = jnp.ones((Cout,), jnp.float32)
        shift = jnp.zeros((Cout,), jnp.float32)

    # ---- stage B: normalize + ReLU over large lane-contiguous row blocks ----
    if has_bn or has_relu:
        y2d = y3d.reshape(R, Cout)                     # contiguous -> free reshape
        rowsB = _pick_rows(R, Cout, jnp.dtype(inter_dtype).itemsize,
                           16 * 1024 * 1024)
        kern_b = partial(_bn_relu_kernel, has_relu=has_relu)
        grid_b = pltpu.PrefetchScalarGridSpec(
            num_scalar_prefetch=0,
            grid=(R // rowsB,),
            in_specs=[
                pl.BlockSpec((rowsB, Cout), lambda i: (i, 0)),
                pl.BlockSpec((1, Cout), lambda i: (0, 0)),
                pl.BlockSpec((1, Cout), lambda i: (0, 0)),
            ],
            out_specs=pl.BlockSpec((rowsB, Cout), lambda i: (i, 0)),
        )
        out2d = pl.pallas_call(
            kern_b,
            out_shape=jax.ShapeDtypeStruct((R, Cout), jnp.float32),
            grid_spec=grid_b,
            compiler_params=pltpu.CompilerParams(
                dimension_semantics=("parallel",),
                vmem_limit_bytes=vmem_limit),
        )(y2d, scale.reshape(1, Cout), shift.reshape(1, Cout))
        out = out2d.reshape(N, Ho, Wo, Cout)
    else:
        out = y3d.reshape(N, Ho, Wo, Cout).astype(jnp.float32)

    return jnp.transpose(out, (0, 3, 1, 2))            # back to NCHW


def _reference(x_nchw, weight, conv_bias, gamma, beta, *, stride, padding,
               has_bn=True, has_relu=True, eps=1e-5):
    y = jax.lax.conv_general_dilated(
        x_nchw, weight, (stride, stride),
        [(padding, padding), (padding, padding)],
        dimension_numbers=('NCHW', 'OIHW', 'NCHW'),
        precision=jax.lax.Precision.HIGHEST)
    y = y + conv_bias[None, :, None, None]
    if has_bn:
        mean = jnp.mean(y, axis=(0, 2, 3), keepdims=True)
        var = jnp.var(y, axis=(0, 2, 3), keepdims=True)     # biased, like BN fwd
        y = (y - mean) * jax.lax.rsqrt(var + eps) * gamma[None, :, None, None] \
            + beta[None, :, None, None]
    if has_relu:
        y = jnp.maximum(y, 0.0)
    return y


if __name__ == "__main__":
    # Module config: conv_bn_relu(in_planes=4, out_planes=8, kernel_size=3,
    #                             stride=1, padding=1, has_bn=True, has_relu=True)
    in_planes, out_planes, ksize, stride, padding = 4, 8, 3, 1, 1
    N, H, W = 2, 16, 16

    key = jax.random.PRNGKey(0)
    kx, kw, kb = jax.random.split(key, 3)
    x = jax.random.normal(kx, (N, in_planes, H, W), dtype=jnp.float32)
    weight = jax.random.normal(kw, (out_planes, in_planes, ksize, ksize),
                               dtype=jnp.float32) * 0.1
    conv_bias = jax.random.normal(kb, (out_planes,), dtype=jnp.float32) * 0.1
    gamma = jnp.ones((out_planes,), dtype=jnp.float32)   # BN default init
    beta = jnp.zeros((out_planes,), dtype=jnp.float32)

    fwd = jax.jit(partial(conv_bn_relu_forward, stride=stride, padding=padding))
    out = jax.block_until_ready(fwd(x, weight, conv_bias, gamma, beta))
    assert out.shape == (N, out_planes, H, W)

    # Check against a reference fed the same bf16-rounded operands (kernel also
    # stores the pre-BN intermediate in bf16, hence the tolerance).
    x_bf = x.astype(jnp.bfloat16).astype(jnp.float32)
    w_bf = weight.astype(jnp.bfloat16).astype(jnp.float32)
    ref_bf = _reference(x_bf, w_bf, conv_bias, gamma, beta,
                        stride=stride, padding=padding)
    err_bf = float(jnp.max(jnp.abs(out - ref_bf)))
    assert jnp.allclose(out, ref_bf, atol=3e-2, rtol=3e-2), \
        f"bf16-operand reference mismatch, max abs err = {err_bf}"

    # Looser check against the full-f32 reference (kernel uses bf16 MXU operands
    # and a bf16 intermediate).
    ref = _reference(x, weight, conv_bias, gamma, beta,
                     stride=stride, padding=padding)
    err = float(jnp.max(jnp.abs(out - ref)))
    assert jnp.allclose(out, ref, atol=7e-2, rtol=7e-2), \
        f"f32 reference mismatch, max abs err = {err}"

    print("KERNEL_OK")
</pallas_src>

<mosaic_0001>
module attributes {stable_mosaic.version = 11 : i64} {
  func.func @_bn_relu_kernel(%arg0: i32, %arg1: memref<512x8xbf16, #tpu.memory_space<vmem>>, %arg2: memref<1x8xf32, #tpu.memory_space<vmem>>, %arg3: memref<1x8xf32, #tpu.memory_space<vmem>>, %arg4: memref<512x8xf32, #tpu.memory_space<vmem>>) attributes {dimension_semantics = [#tpu.dimension_semantics<parallel>], iteration_bounds = array<i64: 1>, scalar_prefetch = 0 : i64, scratch_operands = 0 : i64, tpu.core_type = #tpu.core_type<tc>, window_params = [{transform_indices = @transform_0, window_bounds = array<i64: 512, 8>}, {pipeline_mode = #tpu.pipeline_mode<synchronous>, transform_indices = @transform_1, window_bounds = array<i64: 1, 8>}, {pipeline_mode = #tpu.pipeline_mode<synchronous>, transform_indices = @transform_2, window_bounds = array<i64: 1, 8>}, {transform_indices = @transform_3, window_bounds = array<i64: 512, 8>}]} {
    %c0 = arith.constant 0 : index
    %c0_0 = arith.constant 0 : index
    %0 = vector.load %arg1[%c0, %c0_0] : memref<512x8xbf16, #tpu.memory_space<vmem>>, vector<512x8xbf16>
    %1 = arith.extf %0 : vector<512x8xbf16> to vector<512x8xf32>
    %c0_1 = arith.constant 0 : index
    %c0_2 = arith.constant 0 : index
    %2 = vector.load %arg2[%c0_1, %c0_2] : memref<1x8xf32, #tpu.memory_space<vmem>>, vector<1x8xf32>
    %3 = vector.broadcast %2 : vector<1x8xf32> to vector<512x8xf32>
    %4 = arith.mulf %1, %3 : vector<512x8xf32>
    %c0_3 = arith.constant 0 : index
    %c0_4 = arith.constant 0 : index
    %5 = vector.load %arg3[%c0_3, %c0_4] : memref<1x8xf32, #tpu.memory_space<vmem>>, vector<1x8xf32>
    %6 = vector.broadcast %5 : vector<1x8xf32> to vector<512x8xf32>
    %7 = arith.addf %4, %6 : vector<512x8xf32>
    %cst = arith.constant 0.000000e+00 : f32
    %8 = vector.broadcast %cst : f32 to vector<512x8xf32>
    %9 = arith.maximumf %7, %8 : vector<512x8xf32>
    %c0_5 = arith.constant 0 : index
    %c0_6 = arith.constant 0 : index
    %10 = vector.load %arg4[%c0_5, %c0_6] : memref<512x8xf32, #tpu.memory_space<vmem>>, vector<512x8xf32>
    tpu.vector_store %arg4[%c0_5, %c0_6], %9 {strides = array<i32>} : memref<512x8xf32, #tpu.memory_space<vmem>>, vector<512x8xf32>,
    return
  }
  func.func @transform_0(%arg0: i32) -> (i32, i32) {
    %c0_i32 = arith.constant 0 : i32
    %c0_i32_0 = arith.constant 0 : i32
    return %arg0, %c0_i32 : i32, i32
  }
  func.func @transform_1(%arg0: i32) -> (i32, i32) {
    %c0_i32 = arith.constant 0 : i32
    %c0_i32_0 = arith.constant 0 : i32
    %c0_i32_1 = arith.constant 0 : i32
    return %c0_i32, %c0_i32_0 : i32, i32
  }
  func.func @transform_2(%arg0: i32) -> (i32, i32) {
    %c0_i32 = arith.constant 0 : i32
    %c0_i32_0 = arith.constant 0 : i32
    %c0_i32_1 = arith.constant 0 : i32
    return %c0_i32, %c0_i32_0 : i32, i32
  }
  func.func @transform_3(%arg0: i32) -> (i32, i32) {
    %c0_i32 = arith.constant 0 : i32
    %c0_i32_0 = arith.constant 0 : i32
    return %arg0, %c0_i32 : i32, i32
  }
}

module attributes {stable_mosaic.version = 11 : i64} {
  func.func @_conv_im2col_kernel(%arg0: i32, %arg1: i32, %arg2: memref<1x18x18x4xbf16, #tpu.memory_space<vmem>>, %arg3: memref<36x8xbf16, #tpu.memory_space<vmem>>, %arg4: memref<1x8xf32, #tpu.memory_space<vmem>>, %arg5: memref<1x256x8xbf16, #tpu.memory_space<vmem>>, %arg6: memref<1x1x2x8xf32, #tpu.memory_space<vmem>>) attributes {dimension_semantics = [#tpu.dimension_semantics<parallel>, #tpu.dimension_semantics<parallel>], iteration_bounds = array<i64: 2, 1>, scalar_prefetch = 0 : i64, scratch_operands = 0 : i64, tpu.core_type = #tpu.core_type<tc>, window_params = [{transform_indices = @transform_0, window_bounds = array<i64: 1, 18, 18, 4>}, {pipeline_mode = #tpu.pipeline_mode<synchronous>, transform_indices = @transform_1, window_bounds = array<i64: 36, 8>}, {pipeline_mode = #tpu.pipeline_mode<synchronous>, transform_indices = @transform_2, window_bounds = array<i64: 1, 8>}, {transform_indices = @transform_3, window_bounds = array<i64: 1, 256, 8>}, {transform_indices = @transform_4, window_bounds = array<i64: 1, 1, 2, 8>}]} {
    %c16_i32 = arith.constant 16 : i32
    %0 = arith.muli %arg1, %c16_i32 : i32
    %1 = tpu.assume_multiple %0, 16 : i32
    %c0 = arith.constant 0 : index
    %2 = arith.index_cast %1 : i32 to index
    %c0_0 = arith.constant 0 : index
    %c0_1 = arith.constant 0 : index
    %3 = vector.load %arg2[%c0, %2, %c0_0, %c0_1] : memref<1x18x18x4xbf16, #tpu.memory_space<vmem>>, vector<1x18x18x4xbf16>
    %4 = vector.shape_cast %3 : vector<1x18x18x4xbf16> to vector<18x18x4xbf16>
    %5 = vector.extract_strided_slice %4 {offsets = [0, 0, 0], sizes = [16, 16, 4], strides = [1, 1, 1]} : vector<18x18x4xbf16> to vector<16x16x4xbf16>
    %6 = vector.extract_strided_slice %4 {offsets = [0, 1, 0], sizes = [16, 16, 4], strides = [1, 1, 1]} : vector<18x18x4xbf16> to vector<16x16x4xbf16>
    %7 = vector.extract_strided_slice %4 {offsets = [0, 2, 0], sizes = [16, 16, 4], strides = [1, 1, 1]} : vector<18x18x4xbf16> to vector<16x16x4xbf16>
    %8 = vector.extract_strided_slice %4 {offsets = [1, 0, 0], sizes = [16, 16, 4], strides = [1, 1, 1]} : vector<18x18x4xbf16> to vector<16x16x4xbf16>
    %9 = vector.extract_strided_slice %4 {offsets = [1, 1, 0], sizes = [16, 16, 4], strides = [1, 1, 1]} : vector<18x18x4xbf16> to vector<16x16x4xbf16>
    %10 = vector.extract_strided_slice %4 {offsets = [1, 2, 0], sizes = [16, 16, 4], strides = [1, 1, 1]} : vector<18x18x4xbf16> to vector<16x16x4xbf16>
    %11 = vector.extract_strided_slice %4 {offsets = [2, 0, 0], sizes = [16, 16, 4], strides = [1, 1, 1]} : vector<18x18x4xbf16> to vector<16x16x4xbf16>
    %12 = vector.extract_strided_slice %4 {offsets = [2, 1, 0], sizes = [16, 16, 4], strides = [1, 1, 1]} : vector<18x18x4xbf16> to vector<16x16x4xbf16>
    %13 = vector.extract_strided_slice %4 {offsets = [2, 2, 0], sizes = [16, 16, 4], strides = [1, 1, 1]} : vector<18x18x4xbf16> to vector<16x16x4xbf16>
    %14 = tpu.concatenate %5, %6, %7, %8, %9, %10, %11, %12, %13 in 2 : vector<16x16x4xbf16>, vector<16x16x4xbf16>, vector<16x16x4xbf16>, vector<16x16x4xbf16>, vector<16x16x4xbf16>, vector<16x16x4xbf16>, vector<16x16x4xbf16>, vector<16x16x4xbf16>, vector<16x16x4xbf16> -> vector<16x16x36xbf16>
    %15 = vector.shape_cast %14 : vector<16x16x36xbf16> to vector<256x36xbf16>
    %c0_2 = arith.constant 0 : index
    %c0_3 = arith.constant 0 : index
    %16 = vector.load %arg3[%c0_2, %c0_3] : memref<36x8xbf16, #tpu.memory_space<vmem>>, vector<36x8xbf16>
    %cst = arith.constant dense<0.000000e+00> : vector<256x8xf32>
    %17 = tpu.matmul %15, %16, %cst {dimension_numbers = #tpu.dot_dimension_numbers<[1], [0], [0], [1], [0, 0, 1, 1], [], []>} : vector<256x36xbf16>, vector<36x8xbf16>, vector<256x8xf32> -> vector<256x8xf32>
    %18 = arith.truncf %17 : vector<256x8xf32> to vector<256x8xbf16>
    %c0_4 = arith.constant 0 : index
    %c0_5 = arith.constant 0 : index
    %c0_6 = arith.constant 0 : index
    %19 = vector.load %arg5[%c0_4, %c0_5, %c0_6] : memref<1x256x8xbf16, #tpu.memory_space<vmem>>, vector<1x256x8xbf16>
    %20 = vector.shape_cast %19 : vector<1x256x8xbf16> to vector<256x8xbf16>
    %21 = vector.shape_cast %18 : vector<256x8xbf16> to vector<1x256x8xbf16>
    tpu.vector_store %arg5[%c0_4, %c0_5, %c0_6], %21 {strides = array<i32>} : memref<1x256x8xbf16, #tpu.memory_space<vmem>>, vector<1x256x8xbf16>,
    %cst_7 = arith.constant dense<0.000000e+00> : vector<8xf32>
    %22 = vector.multi_reduction <add>, %17, %cst_7 [0] : vector<256x8xf32> to vector<8xf32>
    %23 = vector.shape_cast %22 : vector<8xf32> to vector<1x8xf32>
    %cst_8 = arith.constant 2.560000e+02 : f32
    %24 = vector.broadcast %cst_8 : f32 to vector<1x8xf32>
    %25 = arith.divf %23, %24 : vector<1x8xf32>
    %26 = vector.broadcast %25 : vector<1x8xf32> to vector<256x8xf32>
    %27 = arith.subf %17, %26 : vector<256x8xf32>
    %28 = arith.mulf %27, %27 : vector<256x8xf32>
    %cst_9 = arith.constant dense<0.000000e+00> : vector<8xf32>
    %29 = vector.multi_reduction <add>, %28, %cst_9 [0] : vector<256x8xf32> to vector<8xf32>
    %30 = vector.shape_cast %29 : vector<8xf32> to vector<1x8xf32>
    %31 = tpu.concatenate %25, %30 in 0 : vector<1x8xf32>, vector<1x8xf32> -> vector<2x8xf32>
    %c0_10 = arith.constant 0 : index
    %c0_11 = arith.constant 0 : index
    %c0_12 = arith.constant 0 : index
    %c0_13 = arith.constant 0 : index
    %32 = vector.load %arg6[%c0_10, %c0_11, %c0_12, %c0_13] : memref<1x1x2x8xf32, #tpu.memory_space<vmem>>, vector<1x1x2x8xf32>
    %33 = vector.shape_cast %32 : vector<1x1x2x8xf32> to vector<2x8xf32>
    %34 = vector.shape_cast %31 : vector<2x8xf32> to vector<1x1x2x8xf32>
    tpu.vector_store %arg6[%c0_10, %c0_11, %c0_12, %c0_13], %34 {strides = array<i32>} : memref<1x1x2x8xf32, #tpu.memory_space<vmem>>, vector<1x1x2x8xf32>,
    return
  }
  func.func @transform_0(%arg0: i32, %arg1: i32) -> (i32, i32, i32, i32) {
    %c0_i32 = arith.constant 0 : i32
    %c0_i32_0 = arith.constant 0 : i32
    %c0_i32_1 = arith.constant 0 : i32
    %c0_i32_2 = arith.constant 0 : i32
    return %arg0, %c0_i32, %c0_i32_0, %c0_i32_1 : i32, i32, i32, i32
  }
  func.func @transform_1(%arg0: i32, %arg1: i32) -> (i32, i32) {
    %c0_i32 = arith.constant 0 : i32
    %c0_i32_0 = arith.constant 0 : i32
    %c0_i32_1 = arith.constant 0 : i32
    return %c0_i32, %c0_i32_0 : i32, i32
  }
  func.func @transform_2(%arg0: i32, %arg1: i32) -> (i32, i32) {
    %c0_i32 = arith.constant 0 : i32
    %c0_i32_0 = arith.constant 0 : i32
    %c0_i32_1 = arith.constant 0 : i32
    return %c0_i32, %c0_i32_0 : i32, i32
  }
  func.func @transform_3(%arg0: i32, %arg1: i32) -> (i32, i32, i32) {
    %c0_i32 = arith.constant 0 : i32
    %c0_i32_0 = arith.constant 0 : i32
    return %arg0, %arg1, %c0_i32 : i32, i32, i32
  }
  func.func @transform_4(%arg0: i32, %arg1: i32) -> (i32, i32, i32, i32) {
    %c0_i32 = arith.constant 0 : i32
    %c0_i32_0 = arith.constant 0 : i32
    %c0_i32_1 = arith.constant 0 : i32
    return %arg0, %arg1, %c0_i32, %c0_i32_0 : i32, i32, i32, i32
  }
}

</mosaic_0001>

<bundles_post_ra>
// kernel: conv_bn_relu_forward.3
= control target key start
LH: loop header
LB: loop body
LE: loop exit
PB: predicated region body
PF: predicated region fallthrough
CT: control target
= control target key end

     0   :  { %vm342_vm0 = vcmask 64512   ;;  %s1082_s0 = inlined_call_operand.vmem [shape: bf16[512,8], index: 0, kind: input, shape index: {}]   ;;  %s1083_s1 = inlined_call_operand.vmem [shape: f32[1,8], index: 1, kind: input, shape index: {}]   ;;  %s1084_s2 = inlined_call_operand.vmem [shape: f32[1,8], index: 2, kind: input, shape index: {}]   ;;  %s1085_s3 = inlined_call_operand.vmem [shape: f32[512,8], index: 3, kind: output, shape index: {}]  }
   0x1   :  { %v412_v0 = vld [vmem:[%s1082_s0] sm:$0xff]   ;;  %v539_v5 = vld [vmem:[%s1082_s0 + $0x8] sm:$0xff]   ;;  %v540_v8 = vld [vmem:[%s1082_s0 + $0x10] sm:$0xff]  }
   0x2   :  { %v598_v1 = vld [vmem:[%s1083_s1] ss:$0 sm:$0xff]  ;;  %v413_v2 = vunpack.c.l.bf16 %v412_v0  ;;  %v414_v4 = vunpack.c.h.bf16 %v412_v0  ;;  %v417_v6 = vunpack.c.l.bf16 %v539_v5  ;;  %v418_v7 = vunpack.c.h.bf16 %v539_v5  ;;  %v541_v9 = vld [vmem:[%s1082_s0 + $0x18] sm:$0xff]   ;;  %v543_v31 = vld [vmem:[%s1082_s0 + $0x28] sm:$0xff]  }
   0x3   :  { %v603_v3 = vld [vmem:[%s1084_s2] ss:$0 sm:$0xff]  ;;  %v421_v12 = vunpack.c.l.bf16 %v540_v8  ;;  %v422_v13 = vunpack.c.h.bf16 %v540_v8  ;;  %v425_v16 = vunpack.c.l.bf16 %v541_v9  ;;  %v426_v17 = vunpack.c.h.bf16 %v541_v9  ;;  %v544_v36 = vld [vmem:[%s1082_s0 + $0x30] sm:$0xff]   ;;  %v545_v41 = vld [vmem:[%s1082_s0 + $0x38] sm:$0xff]  }
   0x4   :  { %v146_v10 = vmul.f32 %v598_v1, %v413_v2  ;;  %v147_v11 = vmul.f32 %v598_v1, %v414_v4  ;;  %v148_v14 = vmul.f32 %v598_v1, %v417_v6  ;;  %v149_v15 = vmul.f32 %v598_v1, %v418_v7  ;;  %v542_v26 = vld [vmem:[%s1082_s0 + $0x20] sm:$0xff]   ;;  %v547_v5 = vld [vmem:[%s1082_s0 + $0x48] sm:$0xff]  }
   0x5   :  { %v150_v20 = vmul.f32 %v598_v1, %v421_v12  ;;  %v151_v21 = vmul.f32 %v598_v1, %v422_v13  ;;  %v152_v24 = vmul.f32 %v598_v1, %v425_v16  ;;  %v153_v25 = vmul.f32 %v598_v1, %v426_v17  ;;  %v546_v62 = vld [vmem:[%s1082_s0 + $0x40] sm:$0xff]  }
   0x6   :  { %v214_v18 = vadd.f32 %v603_v3, %v146_v10  ;;  %v215_v19 = vadd.f32 %v603_v3, %v147_v11  ;;  %v216_v22 = vadd.f32 %v603_v3, %v148_v14  ;;  %v217_v23 = vadd.f32 %v603_v3, %v149_v15  ;;  %v548_v10 = vld [vmem:[%s1082_s0 + $0x50] sm:$0xff]   ;;  %v549_v15 = vld [vmem:[%s1082_s0 + $0x58] sm:$0xff]  }
   0x7   :  { %v218_v29 = vadd.f32 %v603_v3, %v150_v20  ;;  %v219_v30 = vadd.f32 %v603_v3, %v151_v21  ;;  %v220_v34 = vadd.f32 %v603_v3, %v152_v24  ;;  %v221_v35 = vadd.f32 %v603_v3, %v153_v25 }
   0x8   :  { %v278_v27 = vmax.f32 %v214_v18, 0.0  ;;  %v279_v28 = vmax.f32 %v215_v19, 0.0  ;;  %v280_v32 = vmax.f32 %v216_v22, 0.0  ;;  %v281_v33 = vmax.f32 %v217_v23, 0.0 }
   0x9   :  { %v282_v37 = vmax.f32 %v218_v29, 0.0  ;;  %v283_v38 = vmax.f32 %v219_v30, 0.0  ;;  %v429_v39 = vunpack.c.l.bf16 %v542_v26  ;;  %v430_v40 = vunpack.c.h.bf16 %v542_v26 }
   0xa   :  { %343 = vst.msk [vmem:[%s1085_s3] sm:$0xff] %vm342_vm0, %v278_v27  ;;  %v284_v42 = vmax.f32 %v220_v34, 0.0  ;;  %v285_v43 = vmax.f32 %v221_v35, 0.0  ;;  %v433_v44 = vunpack.c.l.bf16 %v543_v31  ;;  %v434_v45 = vunpack.c.h.bf16 %v543_v31 }
   0xb   :  { %344 = vst.msk [vmem:[%s1085_s3 + $0x8] sm:$0xff] %vm342_vm0, %v279_v28  ;;  %v154_v46 = vmul.f32 %v598_v1, %v429_v39  ;;  %v155_v47 = vmul.f32 %v598_v1, %v430_v40  ;;  %v437_v48 = vunpack.c.l.bf16 %v544_v36  ;;  %v438_v49 = vunpack.c.h.bf16 %v544_v36  ;;  %v550_v36 = vld [vmem:[%s1082_s0 + $0x60] sm:$0xff]  }
   0xc   :  { %345 = vst.msk [vmem:[%s1085_s3 + $0x10] sm:$0xff] %vm342_vm0, %v280_v32  ;;  %v156_v50 = vmul.f32 %v598_v1, %v433_v44  ;;  %v157_v51 = vmul.f32 %v598_v1, %v434_v45  ;;  %v441_v52 = vunpack.c.l.bf16 %v545_v41  ;;  %v442_v53 = vunpack.c.h.bf16 %v545_v41  ;;  %v551_v41 = vld [vmem:[%s1082_s0 + $0x68] sm:$0xff]  }
   0xd   :  { %346 = vst.msk [vmem:[%s1085_s3 + $0x18] sm:$0xff] %vm342_vm0, %v281_v33  ;;  %v222_v54 = vadd.f32 %v603_v3, %v154_v46  ;;  %v223_v55 = vadd.f32 %v603_v3, %v155_v47  ;;  %v158_v56 = vmul.f32 %v598_v1, %v437_v48  ;;  %v159_v57 = vmul.f32 %v598_v1, %v438_v49  ;;  %v552_v46 = vld [vmem:[%s1082_s0 + $0x70] sm:$0xff]  }
   0xe   :  { %347 = vst.msk [vmem:[%s1085_s3 + $0x20] sm:$0xff] %vm342_vm0, %v282_v37  ;;  %v224_v58 = vadd.f32 %v603_v3, %v156_v50  ;;  %v225_v59 = vadd.f32 %v603_v3, %v157_v51  ;;  %v160_v60 = vmul.f32 %v598_v1, %v441_v52  ;;  %v161_v61 = vmul.f32 %v598_v1, %v442_v53  ;;  %v553_v51 = vld [vmem:[%s1082_s0 + $0x78] sm:$0xff]  }
   0xf   :  { %348 = vst.msk [vmem:[%s1085_s3 + $0x28] sm:$0xff] %vm342_vm0, %v283_v38  ;;  %v286_v63 = vmax.f32 %v222_v54, 0.0  ;;  %v287_v0 = vmax.f32 %v223_v55, 0.0  ;;  %v226_v2 = vadd.f32 %v603_v3, %v158_v56  ;;  %v227_v4 = vadd.f32 %v603_v3, %v159_v57 }
  0x10   :  { %349 = vst.msk [vmem:[%s1085_s3 + $0x30] sm:$0xff] %vm342_vm0, %v284_v42  ;;  %v288_v6 = vmax.f32 %v224_v58, 0.0  ;;  %v289_v7 = vmax.f32 %v225_v59, 0.0  ;;  %v228_v8 = vadd.f32 %v603_v3, %v160_v60  ;;  %v229_v9 = vadd.f32 %v603_v3, %v161_v61 }
  0x11   :  { %350 = vst.msk [vmem:[%s1085_s3 + $0x38] sm:$0xff] %vm342_vm0, %v285_v43  ;;  %v290_v11 = vmax.f32 %v226_v2, 0.0  ;;  %v291_v12 = vmax.f32 %v227_v4, 0.0  ;;  %v445_v13 = vunpack.c.l.bf16 %v546_v62  ;;  %v446_v14 = vunpack.c.h.bf16 %v546_v62 }
  0x12   :  { %351 = vst.msk [vmem:[%s1085_s3 + $0x40] sm:$0xff] %vm342_vm0, %v286_v63  ;;  %v292_v16 = vmax.f32 %v228_v8, 0.0  ;;  %v293_v17 = vmax.f32 %v229_v9, 0.0  ;;  %v449_v18 = vunpack.c.l.bf16 %v547_v5  ;;  %v450_v19 = vunpack.c.h.bf16 %v547_v5 }
  0x13   :  { %352 = vst.msk [vmem:[%s1085_s3 + $0x48] sm:$0xff] %vm342_vm0, %v287_v0  ;;  %v162_v20 = vmul.f32 %v598_v1, %v445_v13  ;;  %v163_v21 = vmul.f32 %v598_v1, %v446_v14  ;;  %v453_v22 = vunpack.c.l.bf16 %v548_v10  ;;  %v454_v23 = vunpack.c.h.bf16 %v548_v10  ;;  %v554_v10 = vld [vmem:[%s1082_s0 + $0x80] sm:$0xff]  }
  0x14   :  { %353 = vst.msk [vmem:[%s1085_s3 + $0x50] sm:$0xff] %vm342_vm0, %v288_v6  ;;  %v164_v24 = vmul.f32 %v598_v1, %v449_v18  ;;  %v165_v25 = vmul.f32 %v598_v1, %v450_v19  ;;  %v457_v26 = vunpack.c.l.bf16 %v549_v15  ;;  %v458_v27 = vunpack.c.h.bf16 %v549_v15  ;;  %v555_v15 = vld [vmem:[%s1082_s0 + $0x88] sm:$0xff]  }
  0x15   :  { %354 = vst.msk [vmem:[%s1085_s3 + $0x58] sm:$0xff] %vm342_vm0, %v289_v7  ;;  %v230_v28 = vadd.f32 %v603_v3, %v162_v20  ;;  %v231_v29 = vadd.f32 %v603_v3, %v163_v21  ;;  %v166_v30 = vmul.f32 %v598_v1, %v453_v22  ;;  %v167_v31 = vmul.f32 %v598_v1, %v454_v23  ;;  %v556_v20 = vld [vmem:[%s1082_s0 + $0x90] sm:$0xff]  }
  0x16   :  { %355 = vst.msk [vmem:[%s1085_s3 + $0x60] sm:$0xff] %vm342_vm0, %v290_v11  ;;  %v232_v32 = vadd.f32 %v603_v3, %v164_v24  ;;  %v233_v33 = vadd.f32 %v603_v3, %v165_v25  ;;  %v168_v34 = vmul.f32 %v598_v1, %v457_v26  ;;  %v169_v35 = vmul.f32 %v598_v1, %v458_v27  ;;  %v557_v25 = vld [vmem:[%s1082_s0 + $0x98] sm:$0xff]  }
  0x17   :  { %356 = vst.msk [vmem:[%s1085_s3 + $0x68] sm:$0xff] %vm342_vm0, %v291_v12  ;;  %v294_v37 = vmax.f32 %v230_v28, 0.0  ;;  %v295_v38 = vmax.f32 %v231_v29, 0.0  ;;  %v234_v39 = vadd.f32 %v603_v3, %v166_v30  ;;  %v235_v40 = vadd.f32 %v603_v3, %v167_v31 }
  0x18   :  { %357 = vst.msk [vmem:[%s1085_s3 + $0x70] sm:$0xff] %vm342_vm0, %v292_v16  ;;  %v296_v42 = vmax.f32 %v232_v32, 0.0  ;;  %v297_v43 = vmax.f32 %v233_v33, 0.0  ;;  %v236_v44 = vadd.f32 %v603_v3, %v168_v34  ;;  %v237_v45 = vadd.f32 %v603_v3, %v169_v35 }
  0x19   :  { %358 = vst.msk [vmem:[%s1085_s3 + $0x78] sm:$0xff] %vm342_vm0, %v293_v17  ;;  %v298_v47 = vmax.f32 %v234_v39, 0.0  ;;  %v299_v48 = vmax.f32 %v235_v40, 0.0  ;;  %v461_v49 = vunpack.c.l.bf16 %v550_v36  ;;  %v462_v50 = vunpack.c.h.bf16 %v550_v36 }
  0x1a   :  { %359 = vst.msk [vmem:[%s1085_s3 + $0x80] sm:$0xff] %vm342_vm0, %v294_v37  ;;  %v300_v52 = vmax.f32 %v236_v44, 0.0  ;;  %v301_v53 = vmax.f32 %v237_v45, 0.0  ;;  %v465_v54 = vunpack.c.l.bf16 %v551_v41  ;;  %v466_v55 = vunpack.c.h.bf16 %v551_v41 }
  0x1b   :  { %360 = vst.msk [vmem:[%s1085_s3 + $0x88] sm:$0xff] %vm342_vm0, %v295_v38  ;;  %v170_v56 = vmul.f32 %v598_v1, %v461_v49  ;;  %v171_v57 = vmul.f32 %v598_v1, %v462_v50  ;;  %v469_v58 = vunpack.c.l.bf16 %v552_v46  ;;  %v470_v59 = vunpack.c.h.bf16 %v552_v46  ;;  %v558_v46 = vld [vmem:[%s1082_s0 + $0xa0] sm:$0xff]  }
  0x1c   :  { %361 = vst.msk [vmem:[%s1085_s3 + $0x90] sm:$0xff] %vm342_vm0, %v296_v42  ;;  %v172_v60 = vmul.f32 %v598_v1, %v465_v54  ;;  %v173_v61 = vmul.f32 %v598_v1, %v466_v55  ;;  %v473_v62 = vunpack.c.l.bf16 %v553_v51  ;;  %v474_v63 = vunpack.c.h.bf16 %v553_v51  ;;  %v559_v51 = vld [vmem:[%s1082_s0 + $0xa8] sm:$0xff]  }
  0x1d   :  { %362 = vst.msk [vmem:[%s1085_s3 + $0x98] sm:$0xff] %vm342_vm0, %v297_v43  ;;  %v238_v0 = vadd.f32 %v603_v3, %v170_v56  ;;  %v239_v2 = vadd.f32 %v603_v3, %v171_v57  ;;  %v174_v4 = vmul.f32 %v598_v1, %v469_v58  ;;  %v175_v5 = vmul.f32 %v598_v1, %v470_v59  ;;  %v560_v56 = vld [vmem:[%s1082_s0 + $0xb0] sm:$0xff]  }
  0x1e   :  { %363 = vst.msk [vmem:[%s1085_s3 + $0xa0] sm:$0xff] %vm342_vm0, %v298_v47  ;;  %v240_v6 = vadd.f32 %v603_v3, %v172_v60  ;;  %v241_v7 = vadd.f32 %v603_v3, %v173_v61  ;;  %v176_v8 = vmul.f32 %v598_v1, %v473_v62  ;;  %v177_v9 = vmul.f32 %v598_v1, %v474_v63  ;;  %v561_v61 = vld [vmem:[%s1082_s0 + $0xb8] sm:$0xff]  }
  0x1f   :  { %364 = vst.msk [vmem:[%s1085_s3 + $0xa8] sm:$0xff] %vm342_vm0, %v299_v48  ;;  %v302_v11 = vmax.f32 %v238_v0, 0.0  ;;  %v303_v12 = vmax.f32 %v239_v2, 0.0  ;;  %v242_v13 = vadd.f32 %v603_v3, %v174_v4  ;;  %v243_v14 = vadd.f32 %v603_v3, %v175_v5 }
  0x20   :  { %365 = vst.msk [vmem:[%s1085_s3 + $0xb0] sm:$0xff] %vm342_vm0, %v300_v52  ;;  %v304_v16 = vmax.f32 %v240_v6, 0.0  ;;  %v305_v17 = vmax.f32 %v241_v7, 0.0  ;;  %v244_v18 = vadd.f32 %v603_v3, %v176_v8  ;;  %v245_v19 = vadd.f32 %v603_v3, %v177_v9 }
  0x21   :  { %366 = vst.msk [vmem:[%s1085_s3 + $0xb8] sm:$0xff] %vm342_vm0, %v301_v53  ;;  %v306_v21 = vmax.f32 %v242_v13, 0.0  ;;  %v307_v22 = vmax.f32 %v243_v14, 0.0  ;;  %v477_v23 = vunpack.c.l.bf16 %v554_v10  ;;  %v478_v24 = vunpack.c.h.bf16 %v554_v10 }
  0x22   :  { %367 = vst.msk [vmem:[%s1085_s3 + $0xc0] sm:$0xff] %vm342_vm0, %v302_v11  ;;  %v308_v26 = vmax.f32 %v244_v18, 0.0  ;;  %v309_v27 = vmax.f32 %v245_v19, 0.0  ;;  %v481_v28 = vunpack.c.l.bf16 %v555_v15  ;;  %v482_v29 = vunpack.c.h.bf16 %v555_v15 }
  0x23   :  { %368 = vst.msk [vmem:[%s1085_s3 + $0xc8] sm:$0xff] %vm342_vm0, %v303_v12  ;;  %v178_v30 = vmul.f32 %v598_v1, %v477_v23  ;;  %v179_v31 = vmul.f32 %v598_v1, %v478_v24  ;;  %v485_v32 = vunpack.c.l.bf16 %v556_v20  ;;  %v486_v33 = vunpack.c.h.bf16 %v556_v20  ;;  %v562_v20 = vld [vmem:[%s1082_s0 + $0xc0] sm:$0xff]  }
  0x24   :  { %369 = vst.msk [vmem:[%s1085_s3 + $0xd0] sm:$0xff] %vm342_vm0, %v304_v16  ;;  %v180_v34 = vmul.f32 %v598_v1, %v481_v28  ;;  %v181_v35 = vmul.f32 %v598_v1, %v482_v29  ;;  %v489_v36 = vunpack.c.l.bf16 %v557_v25  ;;  %v490_v37 = vunpack.c.h.bf16 %v557_v25  ;;  %v563_v25 = vld [vmem:[%s1082_s0 + $0xc8] sm:$0xff]  }
  0x25   :  { %370 = vst.msk [vmem:[%s1085_s3 + $0xd8] sm:$0xff] %vm342_vm0, %v305_v17  ;;  %v246_v38 = vadd.f32 %v603_v3, %v178_v30  ;;  %v247_v39 = vadd.f32 %v603_v3, %v179_v31  ;;  %v182_v40 = vmul.f32 %v598_v1, %v485_v32  ;;  %v183_v41 = vmul.f32 %v598_v1, %v486_v33  ;;  %v564_v30 = vld [vmem:[%s1082_s0 + $0xd0] sm:$0xff]  }
  0x26   :  { %371 = vst.msk [vmem:[%s1085_s3 + $0xe0] sm:$0xff] %vm342_vm0, %v306_v21  ;;  %v248_v42 = vadd.f32 %v603_v3, %v180_v34  ;;  %v249_v43 = vadd.f32 %v603_v3, %v181_v35  ;;  %v184_v44 = vmul.f32 %v598_v1, %v489_v36  ;;  %v185_v45 = vmul.f32 %v598_v1, %v490_v37  ;;  %v565_v35 = vld [vmem:[%s1082_s0 + $0xd8] sm:$0xff]  }
  0x27   :  { %372 = vst.msk [vmem:[%s1085_s3 + $0xe8] sm:$0xff] %vm342_vm0, %v307_v22  ;;  %v310_v47 = vmax.f32 %v246_v38, 0.0  ;;  %v311_v48 = vmax.f32 %v247_v39, 0.0  ;;  %v250_v49 = vadd.f32 %v603_v3, %v182_v40  ;;  %v251_v50 = vadd.f32 %v603_v3, %v183_v41 }
  0x28   :  { %373 = vst.msk [vmem:[%s1085_s3 + $0xf0] sm:$0xff] %vm342_vm0, %v308_v26  ;;  %v312_v52 = vmax.f32 %v248_v42, 0.0  ;;  %v313_v53 = vmax.f32 %v249_v43, 0.0  ;;  %v252_v54 = vadd.f32 %v603_v3, %v184_v44  ;;  %v253_v55 = vadd.f32 %v603_v3, %v185_v45 }
  0x29   :  { %374 = vst.msk [vmem:[%s1085_s3 + $0xf8] sm:$0xff] %vm342_vm0, %v309_v27  ;;  %v314_v57 = vmax.f32 %v250_v49, 0.0  ;;  %v315_v58 = vmax.f32 %v251_v50, 0.0  ;;  %v493_v59 = vunpack.c.l.bf16 %v558_v46  ;;  %v494_v60 = vunpack.c.h.bf16 %v558_v46 }
  0x2a   :  { %375 = vst.msk [vmem:[%s1085_s3 + $0x100] sm:$0xff] %vm342_vm0, %v310_v47  ;;  %v316_v62 = vmax.f32 %v252_v54, 0.0  ;;  %v317_v63 = vmax.f32 %v253_v55, 0.0  ;;  %v497_v0 = vunpack.c.l.bf16 %v559_v51  ;;  %v498_v2 = vunpack.c.h.bf16 %v559_v51 }
  0x2b   :  { %376 = vst.msk [vmem:[%s1085_s3 + $0x108] sm:$0xff] %vm342_vm0, %v311_v48  ;;  %v186_v4 = vmul.f32 %v598_v1, %v493_v59  ;;  %v187_v5 = vmul.f32 %v598_v1, %v494_v60  ;;  %v501_v6 = vunpack.c.l.bf16 %v560_v56  ;;  %v502_v7 = vunpack.c.h.bf16 %v560_v56  ;;  %v566_v56 = vld [vmem:[%s1082_s0 + $0xe0] sm:$0xff]  }
  0x2c   :  { %377 = vst.msk [vmem:[%s1085_s3 + $0x110] sm:$0xff] %vm342_vm0, %v312_v52  ;;  %v188_v8 = vmul.f32 %v598_v1, %v497_v0  ;;  %v189_v9 = vmul.f32 %v598_v1, %v498_v2  ;;  %v505_v10 = vunpack.c.l.bf16 %v561_v61  ;;  %v506_v11 = vunpack.c.h.bf16 %v561_v61  ;;  %v567_v61 = vld [vmem:[%s1082_s0 + $0xe8] sm:$0xff]  }
  0x2d   :  { %378 = vst.msk [vmem:[%s1085_s3 + $0x118] sm:$0xff] %vm342_vm0, %v313_v53  ;;  %v254_v12 = vadd.f32 %v603_v3, %v186_v4  ;;  %v255_v13 = vadd.f32 %v603_v3, %v187_v5  ;;  %v190_v14 = vmul.f32 %v598_v1, %v501_v6  ;;  %v191_v15 = vmul.f32 %v598_v1, %v502_v7  ;;  %v568_v4 = vld [vmem:[%s1082_s0 + $0xf0] sm:$0xff]  }
  0x2e   :  { %379 = vst.msk [vmem:[%s1085_s3 + $0x120] sm:$0xff] %vm342_vm0, %v314_v57  ;;  %v256_v16 = vadd.f32 %v603_v3, %v188_v8  ;;  %v257_v17 = vadd.f32 %v603_v3, %v189_v9  ;;  %v192_v18 = vmul.f32 %v598_v1, %v505_v10  ;;  %v193_v19 = vmul.f32 %v598_v1, %v506_v11  ;;  %v569_v9 = vld [vmem:[%s1082_s0 + $0xf8] sm:$0xff]  }
  0x2f   :  { %380 = vst.msk [vmem:[%s1085_s3 + $0x128] sm:$0xff] %vm342_vm0, %v315_v58  ;;  %v318_v21 = vmax.f32 %v254_v12, 0.0  ;;  %v319_v22 = vmax.f32 %v255_v13, 0.0  ;;  %v258_v23 = vadd.f32 %v603_v3, %v190_v14  ;;  %v259_v24 = vadd.f32 %v603_v3, %v191_v15 }
  0x30   :  { %381 = vst.msk [vmem:[%s1085_s3 + $0x130] sm:$0xff] %vm342_vm0, %v316_v62  ;;  %v320_v26 = vmax.f32 %v256_v16, 0.0  ;;  %v321_v27 = vmax.f32 %v257_v17, 0.0  ;;  %v260_v28 = vadd.f32 %v603_v3, %v192_v18  ;;  %v261_v29 = vadd.f32 %v603_v3, %v193_v19 }
  0x31   :  { %382 = vst.msk [vmem:[%s1085_s3 + $0x138] sm:$0xff] %vm342_vm0, %v317_v63  ;;  %v322_v31 = vmax.f32 %v258_v23, 0.0  ;;  %v323_v32 = vmax.f32 %v259_v24, 0.0  ;;  %v509_v33 = vunpack.c.l.bf16 %v562_v20  ;;  %v510_v34 = vunpack.c.h.bf16 %v562_v20 }
  0x32   :  { %383 = vst.msk [vmem:[%s1085_s3 + $0x140] sm:$0xff] %vm342_vm0, %v318_v21  ;;  %v324_v36 = vmax.f32 %v260_v28, 0.0  ;;  %v325_v37 = vmax.f32 %v261_v29, 0.0  ;;  %v513_v38 = vunpack.c.l.bf16 %v563_v25  ;;  %v514_v39 = vunpack.c.h.bf16 %v563_v25 }
  0x33   :  { %384 = vst.msk [vmem:[%s1085_s3 + $0x148] sm:$0xff] %vm342_vm0, %v319_v22  ;;  %v194_v40 = vmul.f32 %v598_v1, %v509_v33  ;;  %v195_v41 = vmul.f32 %v598_v1, %v510_v34  ;;  %v517_v42 = vunpack.c.l.bf16 %v564_v30  ;;  %v518_v43 = vunpack.c.h.bf16 %v564_v30 }
  0x34   :  { %385 = vst.msk [vmem:[%s1085_s3 + $0x150] sm:$0xff] %vm342_vm0, %v320_v26  ;;  %v196_v44 = vmul.f32 %v598_v1, %v513_v38  ;;  %v197_v45 = vmul.f32 %v598_v1, %v514_v39  ;;  %v521_v46 = vunpack.c.l.bf16 %v565_v35  ;;  %v522_v47 = vunpack.c.h.bf16 %v565_v35 }
  0x35   :  { %386 = vst.msk [vmem:[%s1085_s3 + $0x158] sm:$0xff] %vm342_vm0, %v321_v27  ;;  %v262_v48 = vadd.f32 %v603_v3, %v194_v40  ;;  %v263_v49 = vadd.f32 %v603_v3, %v195_v41  ;;  %v198_v50 = vmul.f32 %v598_v1, %v517_v42  ;;  %v199_v51 = vmul.f32 %v598_v1, %v518_v43 }
  0x36   :  { %387 = vst.msk [vmem:[%s1085_s3 + $0x160] sm:$0xff] %vm342_vm0, %v322_v31  ;;  %v264_v52 = vadd.f32 %v603_v3, %v196_v44  ;;  %v265_v53 = vadd.f32 %v603_v3, %v197_v45  ;;  %v200_v54 = vmul.f32 %v598_v1, %v521_v46  ;;  %v201_v55 = vmul.f32 %v598_v1, %v522_v47 }
  0x37   :  { %388 = vst.msk [vmem:[%s1085_s3 + $0x168] sm:$0xff] %vm342_vm0, %v323_v32  ;;  %v326_v57 = vmax.f32 %v262_v48, 0.0  ;;  %v327_v58 = vmax.f32 %v263_v49, 0.0  ;;  %v266_v59 = vadd.f32 %v603_v3, %v198_v50  ;;  %v267_v60 = vadd.f32 %v603_v3, %v199_v51 }
  0x38   :  { %389 = vst.msk [vmem:[%s1085_s3 + $0x170] sm:$0xff] %vm342_vm0, %v324_v36  ;;  %v328_v62 = vmax.f32 %v264_v52, 0.0  ;;  %v329_v63 = vmax.f32 %v265_v53, 0.0  ;;  %v268_v0 = vadd.f32 %v603_v3, %v200_v54  ;;  %v269_v2 = vadd.f32 %v603_v3, %v201_v55 }
  0x39   :  { %390 = vst.msk [vmem:[%s1085_s3 + $0x178] sm:$0xff] %vm342_vm0, %v325_v37  ;;  %v330_v5 = vmax.f32 %v266_v59, 0.0  ;;  %v331_v6 = vmax.f32 %v267_v60, 0.0  ;;  %v525_v7 = vunpack.c.l.bf16 %v566_v56  ;;  %v526_v8 = vunpack.c.h.bf16 %v566_v56 }
  0x3a   :  { %391 = vst.msk [vmem:[%s1085_s3 + $0x180] sm:$0xff] %vm342_vm0, %v326_v57  ;;  %v332_v10 = vmax.f32 %v268_v0, 0.0  ;;  %v333_v11 = vmax.f32 %v269_v2, 0.0  ;;  %v529_v12 = vunpack.c.l.bf16 %v567_v61  ;;  %v530_v13 = vunpack.c.h.bf16 %v567_v61 }
  0x3b   :  { %392 = vst.msk [vmem:[%s1085_s3 + $0x188] sm:$0xff] %vm342_vm0, %v327_v58  ;;  %v202_v14 = vmul.f32 %v598_v1, %v525_v7  ;;  %v203_v15 = vmul.f32 %v598_v1, %v526_v8  ;;  %v533_v16 = vunpack.c.l.bf16 %v568_v4  ;;  %v534_v17 = vunpack.c.h.bf16 %v568_v4 }
  0x3c   :  { %393 = vst.msk [vmem:[%s1085_s3 + $0x190] sm:$0xff] %vm342_vm0, %v328_v62  ;;  %v204_v18 = vmul.f32 %v598_v1, %v529_v12  ;;  %v205_v19 = vmul.f32 %v598_v1, %v530_v13  ;;  %v537_v20 = vunpack.c.l.bf16 %v569_v9  ;;  %v538_v21 = vunpack.c.h.bf16 %v569_v9 }
  0x3d   :  { %394 = vst.msk [vmem:[%s1085_s3 + $0x198] sm:$0xff] %vm342_vm0, %v329_v63  ;;  %v270_v22 = vadd.f32 %v603_v3, %v202_v14  ;;  %v271_v23 = vadd.f32 %v603_v3, %v203_v15  ;;  %v206_v24 = vmul.f32 %v598_v1, %v533_v16  ;;  %v207_v25 = vmul.f32 %v598_v1, %v534_v17 }
  0x3e   :  { %395 = vst.msk [vmem:[%s1085_s3 + $0x1a0] sm:$0xff] %vm342_vm0, %v330_v5  ;;  %v272_v26 = vadd.f32 %v603_v3, %v204_v18  ;;  %v273_v27 = vadd.f32 %v603_v3, %v205_v19  ;;  %v208_v28 = vmul.f32 %v598_v1, %v537_v20  ;;  %v209_v29 = vmul.f32 %v598_v1, %v538_v21 }
  0x3f   :  { %396 = vst.msk [vmem:[%s1085_s3 + $0x1a8] sm:$0xff] %vm342_vm0, %v331_v6  ;;  %v334_v30 = vmax.f32 %v270_v22, 0.0  ;;  %v335_v31 = vmax.f32 %v271_v23, 0.0  ;;  %v274_v32 = vadd.f32 %v603_v3, %v206_v24  ;;  %v275_v33 = vadd.f32 %v603_v3, %v207_v25 }
  0x40   :  { %397 = vst.msk [vmem:[%s1085_s3 + $0x1b0] sm:$0xff] %vm342_vm0, %v332_v10  ;;  %v336_v34 = vmax.f32 %v272_v26, 0.0  ;;  %v337_v35 = vmax.f32 %v273_v27, 0.0  ;;  %v276_v1 = vadd.f32 %v603_v3, %v208_v28  ;;  %v277_v36 = vadd.f32 %v603_v3, %v209_v29 }
  0x41   :  { %398 = vst.msk [vmem:[%s1085_s3 + $0x1b8] sm:$0xff] %vm342_vm0, %v333_v11  ;;  %v338_v37 = vmax.f32 %v274_v32, 0.0  ;;  %v339_v38 = vmax.f32 %v275_v33, 0.0 }
  0x42   :  { %399 = vst.msk [vmem:[%s1085_s3 + $0x1c0] sm:$0xff] %vm342_vm0, %v334_v30  ;;  %v340_v39 = vmax.f32 %v276_v1, 0.0  ;;  %v341_v3 = vmax.f32 %v277_v36, 0.0 }
  0x43   :  { %400 = vst.msk [vmem:[%s1085_s3 + $0x1c8] sm:$0xff] %vm342_vm0, %v335_v31 }
  0x44   :  { %401 = vst.msk [vmem:[%s1085_s3 + $0x1d0] sm:$0xff] %vm342_vm0, %v336_v34 }
  0x45   :  { %402 = vst.msk [vmem:[%s1085_s3 + $0x1d8] sm:$0xff] %vm342_vm0, %v337_v35 }
  0x46   :  { %403 = vst.msk [vmem:[%s1085_s3 + $0x1e0] sm:$0xff] %vm342_vm0, %v338_v37 }
  0x47   :  { %404 = vst.msk [vmem:[%s1085_s3 + $0x1e8] sm:$0xff] %vm342_vm0, %v339_v38 }
  0x48   :  { %405 = vst.msk [vmem:[%s1085_s3 + $0x1f0] sm:$0xff] %vm342_vm0, %v340_v39 }
  0x49   :  { %406 = vst.msk [vmem:[%s1085_s3 + $0x1f8] sm:$0xff] %vm342_vm0, %v341_v3 }

// kernel: conv_bn_relu_forward.2
= control target key start
LH: loop header
LB: loop body
LE: loop exit
PB: predicated region body
PF: predicated region fallthrough
CT: control target
= control target key end

     0   :  { %s2016_s15 = smov 0   ;;  %s2018_s16 = smov 0   ;;  %s3134_s0 = inlined_call_operand.vmem [shape: bf16[2,18,18,4], index: 0, kind: input, shape index: {}]   ;;  %s3135_s1 = inlined_call_operand.vmem [shape: bf16[36,8], index: 1, kind: input, shape index: {}]   ;;  %s3136_s2 = inlined_call_operand.vmem [shape: f32[1,8], index: 2, kind: input, shape index: {}]   ;;  %s3137_s3 = inlined_call_operand.vmem [shape: bf16[2,256,8], index: 3, kind: output, shape index: {0}]   ;;  %s3138_s4 = inlined_call_operand.vmem [shape: f32[2,1,2,8], index: 4, kind: output, shape index: {1}]  }
   0x1   :  { %s2020_s17 = smov 0  }
   0x2 LB: > { %s27_s2 = sadd.s32 1, %s1976_s16  ;;  %p1788_p0 = scmp.ge.s32.totalorder %s1980_s17, 1  ;;  %s1980_s17 = sphi %s2020_s17, %s15_s17   ;;  %s1976_s16 = sphi %s2018_s16, %s3140_s16   ;;  %s1972_s15 = sphi %s2016_s15, %s3139_s15  }
   0x3   : > { %p29_p1 = scmp.ge.s32.totalorder %s27_s2, 2  ;;  %p181_p2 = scmp.lt.s32.totalorder %s1980_s17, 3 }
   0x5   : > { %s3142_s2 = smov (%p29_p1, %s27_s2), 0  ;;  %p182_p3 = pnand %p1788_p0, %p181_p2 }
   0x6   : > { %p218_p4 = scmp.lt.s32.totalorder (!%p182_p3), %s1972_s15, 1  ;;  %s1982_s22 = smov (!%p182_p3), 12  }
   0x7   : > { %185 = sbr.rel (%p182_p3) target bundleno = 718 (0x2ce), region = 32  ;;  %s1983_s23 = smov (!%p182_p3), 20  }
   0x8   : > { %s1984_s24 = smov (!%p182_p3), 4   ;;  %s1985_s25 = smov (!%p182_p3), 8  }
   0x9   : > { %s1986_s26 = smov (!%p182_p3), 24   ;;  %s1987_s27 = smov (!%p182_p3), 16  }
   0xa   : > { %s1988_s28 = smov (!%p182_p3), 32   ;;  %s1989_s29 = smov (!%p182_p3), 28  }
   0xc   : > { %s3144_s15 = smov (!%p218_p4, %s1972_s15), 1  ;;  %vm652_vm0 = vcmask 1046528   ;;  %vm427_vm1 = vsmask.f32 7424  ;;  %vm1288_vm2 = vcmask 1041408   ;;  %vm971_vm3 = vcmask 31744  }
   0xd   : > { %s1921_s18 = smul.u32 216, %s3144_s15  ;;  %vm1004_vm4 = vcmask 64512   ;;  %vm1037_vm5 = vcmask 97280   ;;  %vm1070_vm6 = vcmask 130048   ;;  %vm1103_vm7 = vcmask 162816   ;;  %s1891_s10 = sshll.u32 %s3144_s15, 7 }
   0xe   : > { %vm1136_vm8 = vcmask 195584   ;;  %vm1169_vm9 = vcmask 228352   ;;  %vm1202_vm10 = vcmask 261120   ;;  %vm1255_vm11 = vcmask 293888   ;;  %s2582_s13 = scalar_lea.vmem %s3137_s3, %s1891_s10  ;;  %s1792_s14 = sshll.u32 %s3144_s15, 1 }
   0xf   : > { %s2040_s21 = scalar_lea.vmem %s3134_s0, %s1921_s18  ;;  %vm1413_vm12 = vcmask 60416   ;;  %vm1656_vm14 = vcmask 1040384   ;;  %s239_s20 = scalar_lea.vmem %s3138_s4, %s1792_s14  ;;  %vm1658_vm15 = vcmask 58368  }
  0x10   : > { %v2043_v0 = vld [vmem:[%s2040_s21 + $0xc] sm:$0xff]  ;;  %v250_v1 = vld [vmem:[%s2040_s21 + $0x14] sm:$0x1]  ;;  %v2047_v2 = vld [vmem:[%s2040_s21] sm:$0xff] }
  0x11   : > { %v396_v3 = vunpack.c.l.b16 %v250_v1  ;;  %v247_v4 = vld [vmem:[%s2040_s21 + $0x8] sm:$0x1]  ;;  %v2051_v5 = vld [vmem:[%s2040_s21 + $0x18] sm:$0xff]  ;;  %v253_v6 = vld [vmem:[%s2040_s21 + $0x20] sm:$0x1]  ;;  %v429_v8 = vshrl.u32 %v2047_v2, 16  ;;  %738 = vrot.lane.b32.xlu2 %v2043_v0, %s1982_s22 }
  0x12   : > { %v395_v7 = vunpack.c.l.b16 %v247_v4  ;;  %v431_v9 = vshll.u32 %v2047_v2, 16  ;;  %v656_v11 = vrot.slane %v2043_v0, 1  ;;  %v397_v12 = vunpack.c.l.b16 %v253_v6  ;;  %v256_v14 = vld [vmem:[%s2040_s21 + $0x2c] sm:$0x1]  ;;  %v2064_v22 = vld [vmem:[%s2040_s21 + $0x24] sm:$0xff]  ;;  %v2084_v47 = vld [vmem:[%s2040_s21 + $0x30] sm:$0xff] }
  0x13   : > { %v412_v10 = vpack.c.b16 %v396_v3, %v396_v3  ;;  %v455_v13 = vshll.u32 %v2051_v5, 16  ;;  %v443_v17 = vshll.u32 %v2043_v0, 16  ;;  %v453_v20 = vshrl.u32 %v2051_v5, 16  ;;  %v259_v38 = vld [vmem:[%s2040_s21 + $0x38] sm:$0x1]  ;;  %v2109_v3 = vld [vmem:[%s2040_s21 + $0x3c] sm:$0xff] }
  0x14   : > { %v411_v15 = vpack.c.b16 %v395_v7, %v395_v7  ;;  %v433_v16 = vrot.slane %v431_v9, 1  ;;  %v413_v19 = vpack.c.b16 %v397_v12, %v397_v12  ;;  %v398_v25 = vunpack.c.l.b16 %v256_v14  ;;  %v262_v62 = vld [vmem:[%s2040_s21 + $0x44] sm:$0x1] }
  0x15   : > { %v657_v18 = vrot.slane %v412_v10, 1  ;;  %v457_v21 = vrot.slane %v455_v13, 1  ;;  %v441_v28 = vshrl.u32 %v2043_v0, 16  ;;  %v445_v30 = vrot.slane %v443_v17, 1 }
  0x16   : > { %v434_v23 = vor.u32 %v433_v16, %v429_v8  ;;  %v436_v24 = vshll.u32 %v411_v15, 16  ;;  %v460_v27 = vshll.u32 %v413_v19, 16  ;;  %v448_v31 = vshll.u32 %v412_v10, 16  ;;  %v265_v16 = vld [vmem:[%s2040_s21 + $0x50] sm:$0x1] }
  0x17   : > { %v2067_v26 = vsel %vm652_vm0, %v656_v11, %v657_v18  ;;  %v2072_v32 = vpack.c.b16 %v398_v25, %v398_v25  ;;  %v458_v33 = vor.u32 %v457_v21, %v453_v20  ;;  %v467_v35 = vshll.u32 %v2064_v22, 16  ;;  %v2133_v18 = vld [vmem:[%s2040_s21 + $0x48] sm:$0xff] }
  0x18   : > { %820 = vrot.lane.b32.xlu1 %v2067_v26, %s1983_s23  ;;  %v438_v29 = vrot.slane %v436_v24, 1  ;;  %v462_v34 = vrot.slane %v460_v27, 1  ;;  %v653_v37 = vrot.slane %v2047_v2, 1  ;;  %v654_v39 = vrot.slane %v411_v15, 1  ;;  %v271_v25 = vld [vmem:[%s2040_s21 + $0x68] sm:$0x1] }
  0x19   : > { %v446_v40 = vor.u32 %v445_v30, %v441_v28  ;;  %v450_v41 = vrot.slane %v448_v31, 1  ;;  %v465_v42 = vshrl.u32 %v2064_v22, 16  ;;  %v472_v43 = vshll.u32 %v2072_v32, 16  ;;  %v2148_v30 = vld [vmem:[%s2040_s21 + $0x60] sm:$0xff] }
  0x1a   : > { %v439_v36 = vsel %vm427_vm1, %v434_v23, %v438_v29  ;;  %v463_v44 = vsel %vm427_vm1, %v458_v33, %v462_v34  ;;  %v469_v45 = vrot.slane %v467_v35, 1  ;;  %v655_v46 = vsel %vm652_vm0, %v653_v37, %v654_v39  ;;  %v274_v37 = vld [vmem:[%s2040_s21 + $0x74] sm:$0x1] }
  0x1b   : > { %620 = vrot.lane.b32.xlu0 %v439_v36, %s1984_s24  ;;  %v399_v48 = vunpack.c.l.b16 %v259_v38  ;;  %701 = vrot.lane.b32.xlu2 %v655_v46, %s1985_s25  ;;  %v479_v49 = vshll.u32 %v2084_v47, 16  ;;  %v451_v50 = vsel %vm427_vm1, %v446_v40, %v450_v41  ;;  %v474_v52 = vrot.slane %v472_v43, 1 }
  0x1c   : > { %v470_v51 = vor.u32 %v469_v45, %v465_v42  ;;  %v477_v54 = vshrl.u32 %v2084_v47, 16  ;;  %v659_v60 = vrot.slane %v2051_v5, 1  ;;  %v660_v61 = vrot.slane %v413_v19, 1  ;;  %v2163_v42 = vld [vmem:[%s2040_s21 + $0x6c] sm:$0xff] }
  0x1d   : > { %v415_v53 = vpack.c.b16 %v399_v48, %v399_v48  ;;  %v481_v55 = vrot.slane %v479_v49, 1  ;;  %v400_v4 = vunpack.c.l.b16 %v262_v62  ;;  %v491_v6 = vshll.u32 %v2109_v3, 16 }
  0x1e   : > { %v2093_v57 = vsel %vm427_vm1, %v470_v51, %v474_v52  ;;  %v2106_v1 = vsel %vm652_vm0, %v659_v60, %v660_v61  ;;  %v665_v7 = vrot.slane %v2084_v47, 1  ;;  %v489_v10 = vshrl.u32 %v2109_v3, 16 }
  0x1f   : > { %v484_v56 = vshll.u32 %v415_v53, 16  ;;  %v482_v58 = vor.u32 %v481_v55, %v477_v54  ;;  %v666_v8 = vrot.slane %v415_v53, 1  ;;  %v416_v9 = vpack.c.b16 %v400_v4, %v400_v4 }
  0x20   : > { %624 = vrot.lane.b32.xlu1 %v463_v44, %s1984_s24  ;;  %v493_v11 = vrot.slane %v491_v6, 1  ;;  %v401_v19 = vunpack.c.l.b16 %v265_v16  ;;  %v503_v20 = vshll.u32 %v2133_v18, 16  ;;  %v668_v21 = vrot.slane %v2109_v3, 1  ;;  %v277_v6 = vld [vmem:[%s2040_s21 + $0x80] sm:$0x1] }
  0x21   : > { %v486_v59 = vrot.slane %v484_v56, 1  ;;  %v496_v12 = vshll.u32 %v416_v9, 16  ;;  %v2120_v13 = vsel %vm652_vm0, %v665_v7, %v666_v8  ;;  %v669_v23 = vrot.slane %v416_v9, 1  ;;  %v2204_v9 = vld [vmem:[%s2040_s21 + $0x78] sm:$0xff] }
  0x22   : > { %v494_v14 = vor.u32 %v493_v11, %v489_v10  ;;  %v417_v24 = vpack.c.b16 %v401_v19, %v401_v19  ;;  %v505_v27 = vrot.slane %v503_v20, 1  ;;  %v403_v31 = vunpack.c.l.b16 %v271_v25 }
  0x23   : > { %622 = vrot.lane.b32.xlu0 %v451_v50, %s1984_s24  ;;  %857 = vrot.lane.b32.xlu2 %v2051_v5, %s1986_s26  ;;  %v2103_v63 = vsel %vm427_vm1, %v482_v58, %v486_v59  ;;  %v498_v15 = vrot.slane %v496_v12, 1  ;;  %v2145_v29 = vsel %vm652_vm0, %v668_v21, %v669_v23  ;;  %v527_v35 = vshll.u32 %v2148_v30, 16 }
  0x24   : > { %v508_v28 = vshll.u32 %v417_v24, 16  ;;  %v419_v36 = vpack.c.b16 %v403_v31, %v403_v31  ;;  %v525_v39 = vshrl.u32 %v2148_v30, 16  ;;  %v404_v43 = vunpack.c.l.b16 %v274_v37  ;;  %v2248_v37 = vld [vmem:[%s2040_s21 + $0x54] sm:$0xff] }
  0x25   : > { %v2130_v17 = vsel %vm427_vm1, %v494_v14, %v498_v15  ;;  %v529_v40 = vrot.slane %v527_v35, 1  ;;  %v539_v46 = vshll.u32 %v2163_v42, 16  ;;  %v671_v48 = vrot.slane %v2133_v18, 1 }
  0x26   : > { %v510_v34 = vrot.slane %v508_v28, 1  ;;  %v532_v41 = vshll.u32 %v419_v36, 16  ;;  %v672_v49 = vrot.slane %v417_v24, 1  ;;  %v537_v52 = vshrl.u32 %v2163_v42, 16  ;;  %v1239_v28 = vld [vmem:[%s3135_s1 + $0x10] sm:$0x3] }
  0x27   : > { %v541_v53 = vrot.slane %v539_v46, 1  ;;  %v662_v55 = vrot.slane %v2064_v22, 1  ;;  %v663_v56 = vrot.slane %v2072_v32, 1  ;;  %v677_v62 = vrot.slane %v2148_v30, 1 }
  0x28   : > { %626 = vrot.lane.b32.xlu1 %v2093_v57, %s1984_s24  ;;  %v534_v45 = vrot.slane %v532_v41, 1  ;;  %v2180_v58 = vsel %vm652_vm0, %v671_v48, %v672_v49  ;;  %v678_v4 = vrot.slane %v419_v36, 1  ;;  %v405_v8 = vunpack.c.l.b16 %v277_v6 }
  0x29   : > { %v542_v59 = vor.u32 %v541_v53, %v537_v52  ;;  %v2187_v61 = vsel %vm652_vm0, %v662_v55, %v663_v56  ;;  %v680_v10 = vrot.slane %v2163_v42, 1  ;;  %v551_v14 = vshll.u32 %v2204_v9, 16 }
  0x2a   : > { %v2201_v7 = vsel %vm652_vm0, %v677_v62, %v678_v4  ;;  %v421_v12 = vpack.c.b16 %v405_v8, %v405_v8  ;;  %v549_v16 = vshrl.u32 %v2204_v9, 16  ;;  %v513_v46 = vshrl.u32 %v2248_v37, 16 }
  0x2b   : > { %785 = vrot.lane.b32.xlu0 %v451_v50, %s1987_s27  ;;  %628 = vrot.lane.b32.xlu2 %v2103_v63, %s1984_s24  ;;  %v420_v50 = vpack.c.b16 %v404_v43, %v404_v43  ;;  %v553_v19 = vrot.slane %v551_v14, 1  ;;  %v515_v43 = vshll.u32 %v2248_v37, 16 }
  0x2c   : > { %v556_v20 = vshll.u32 %v421_v12, 16 }
  0x2d   : > { %v544_v54 = vshll.u32 %v420_v50, 16  ;;  %v681_v11 = vrot.slane %v420_v50, 1  ;;  %v554_v21 = vor.u32 %v553_v19, %v549_v16  ;;  %v517_v48 = vrot.slane %v515_v43, 1  ;;  %v2268_v50 = vld [vmem:[%s2040_s21 + $0x90] sm:$0xff]  ;;  %v286_v16 = vld [vmem:[%s2040_s21 + $0xa4] sm:$0x1] }
  0x2e   : > { %v558_v23 = vrot.slane %v556_v20, 1  ;;  %v674_v20 = vrot.slane %v2248_v37, 1 }
  0x2f   : > { %v546_v60 = vrot.slane %v544_v54, 1  ;;  %v2215_v15 = vsel %vm652_vm0, %v680_v10, %v681_v11  ;;  %v518_v54 = vor.u32 %v517_v48, %v513_v46 }
  0x30   : > { %939 = vrot.lane.b32.xlu1 %v2106_v1, %s1988_s28  ;;  %v2227_v25 = vsel %vm427_vm1, %v554_v21, %v558_v23 }
  0x31   : > { %v2192_v32 = vsel %vm427_vm1, %v542_v59, %v546_v60  ;;  %v573_v60 = vshrl.u32 %v2268_v50, 16 }
  0x33   : > { %904 = vrot.lane.b32.xlu0 %v463_v44, %s1989_s29  ;;  %740 = vrot.lane.b32.xlu2 %v2051_v5, %s1982_s22 }
  0x38   : > { %709 = vrot.lane.b32.xlu1 %v2120_v13, %s1985_s25 }
  0x3b   : > { %703 = vrot.lane.b32.xlu0 %v2067_v26, %s1985_s25  ;;  %793 = vrot.lane.b32.xlu2 %v2130_v17, %s1987_s27  ;;  %v501_v26 = vshrl.u32 %v2133_v18, 16 }
  0x3d   : > { %v506_v33 = vor.u32 %v505_v27, %v501_v26  ;;  %v683_v26 = vrot.slane %v2204_v9, 1  ;;  %v684_v27 = vrot.slane %v421_v12, 1 }
  0x3f   : > { %v2159_v38 = vsel %vm427_vm1, %v506_v33, %v510_v34  ;;  %v1249_v33 = vunpack.c.l.b16 %v1239_v28  ;;  %v268_v34 = vld [vmem:[%s2040_s21 + $0x5c] sm:$0x1] }
  0x40   : > { %787 = vrot.lane.b32.xlu1 %v463_v44, %s1987_s27  ;;  %v530_v44 = vor.u32 %v529_v40, %v525_v39  ;;  %v402_v39 = vunpack.c.l.b16 %v268_v34 }
  0x41   : > { %v1252_v35 = vpack.c.b16 %v1249_v33, %v1249_v33 }
  0x42   : > { %v2174_v51 = vsel %vm427_vm1, %v530_v44, %v534_v45  ;;  %v418_v41 = vpack.c.b16 %v402_v39, %v402_v39  ;;  %v283_v44 = vld [vmem:[%s2040_s21 + $0x98] sm:$0x1]  ;;  %v1910_v45 = vld [vmem:[%s3135_s1] sm:$0xff] }
  0x43   : > { %746 = vrot.lane.b32.xlu0 %v2109_v3, %s1982_s22  ;;  %859 = vrot.lane.b32.xlu2 %v2064_v22, %s1986_s26  ;;  %v1290_v36 = vsel %vm1288_vm2, %v1252_v35, 0  ;;  %v407_v52 = vunpack.c.l.b16 %v283_v44 }
  0x44   : > { %1297 = vmatpush.bf16.msra.mxu0 %v1290_v36  ;;  %1912 = vmatpush.bf16.msra.mxu1 %v1290_v36  ;;  %v520_v49 = vshll.u32 %v418_v41, 16  ;;  %v675_v21 = vrot.slane %v418_v41, 1 }
  0x45   : > { %1913 = vmatpush.bf16.msra.mxu2 %v1290_v36  ;;  %1914 = vmatpush.bf16.msra.mxu3 %v1290_v36  ;;  %v423_v56 = vpack.c.b16 %v407_v52, %v407_v52  ;;  %v689_v36 = vrot.slane %v2268_v50, 1 }
  0x46   : > { %v522_v55 = vrot.slane %v520_v49, 1  ;;  %v2311_v34 = vsel %vm652_vm0, %v674_v20, %v675_v21 }
  0x47   : > { %v580_v4 = vshll.u32 %v423_v56, 16  ;;  %v690_v39 = vrot.slane %v423_v56, 1 }
  0x48   : > { %828 = vrot.lane.b32.xlu1 %v2145_v29, %s1983_s23  ;;  %v2281_v8 = vsel %vm427_vm1, %v518_v54, %v522_v55  ;;  %v280_v55 = vld [vmem:[%s2040_s21 + $0x8c] sm:$0x1] }
  0x49   : > { %v582_v11 = vrot.slane %v580_v4, 1  ;;  %v2324_v48 = vsel %vm652_vm0, %v689_v36, %v690_v39  ;;  %v406_v4 = vunpack.c.l.b16 %v280_v55 }
  0x4b   : > { %822 = vrot.lane.b32.xlu0 %v2106_v1, %s1983_s23  ;;  %912 = vrot.lane.b32.xlu2 %v2159_v38, %s1989_s29 }
  0x50   : > { %906 = vrot.lane.b32.xlu1 %v2093_v57, %s1989_s29 }
  0x53   : > { %865 = vrot.lane.b32.xlu0 %v2133_v18, %s1986_s26  ;;  %636 = vrot.lane.b32.xlu2 %v2174_v51, %s1984_s24 }
  0x58   : > { %947 = vrot.lane.b32.xlu1 %v2180_v58, %s1988_s28 }
  0x5b   : > { %941 = vrot.lane.b32.xlu0 %v2187_v61, %s1988_s28  ;;  %801 = vrot.lane.b32.xlu2 %v2192_v32, %s1987_s27 }
  0x60   : > { %754 = vrot.lane.b32.xlu1 %v2163_v42, %s1982_s22 }
  0x63   : > { %717 = vrot.lane.b32.xlu0 %v2201_v7, %s1985_s25  ;;  %630 = vrot.lane.b32.xlu2 %v2130_v17, %s1984_s24 }
  0x68   : > { %873 = vrot.lane.b32.xlu1 %v2204_v9, %s1986_s26 }
  0x6b   : > { %836 = vrot.lane.b32.xlu0 %v2215_v15, %s1983_s23  ;;  %711 = vrot.lane.b32.xlu2 %v2145_v29, %s1985_s25  ;;  %v2222_v24 = vpop.permute.xlu2 %738 }
  0x70   : > { %705 = vrot.lane.b32.xlu1 %v2106_v1, %s1985_s25  ;;  %v2240_v1 = vsel %vm652_vm0, %v683_v26, %v684_v27  ;;  %v2301_v26 = vld [vmem:[%s2040_s21 + $0x9c] sm:$0xff]  ;;  %v408_v27 = vunpack.c.l.b16 %v286_v16  ;;  %v2351_v16 = vpack.c.b16 %v406_v4, %v406_v4 }
  0x71   : > { %v587_v28 = vshll.u32 %v2301_v26, 16  ;;  %v692_v21 = vrot.slane %v2301_v26, 1 }
  0x72   : > { %v568_v39 = vshll.u32 %v2351_v16, 16 }
  0x73   : > { %920 = vrot.lane.b32.xlu0 %v2227_v25, %s1989_s29  ;;  %748 = vrot.lane.b32.xlu2 %v2133_v18, %s1982_s22  ;;  %v589_v44 = vrot.slane %v587_v28, 1 }
  0x75   : > { %v2242_v31 = vpop.permute.xlu2 %701 }
  0x78   : > { %742 = vrot.lane.b32.xlu1 %v2064_v22, %s1982_s22  ;;  %v1911_v22 = vld [vmem:[%s3135_s1 + $0x8] sm:$0xff] }
  0x79   : > { %1298 = vmatpush.bf16.msra.mxu0 %v1911_v22  ;;  %1915 = vmatpush.bf16.msra.mxu1 %v1911_v22 }
  0x7a   : > { %1916 = vmatpush.bf16.msra.mxu2 %v1911_v22  ;;  %1917 = vmatpush.bf16.msra.mxu3 %v1911_v22  ;;  %v424_v22 = vpack.c.b16 %v408_v27, %v408_v27 }
  0x7b   : > { %955 = vrot.lane.b32.xlu0 %v2240_v1, %s1988_s28  ;;  %824 = vrot.lane.b32.xlu2 %v2187_v61, %s1983_s23 }
  0x7c   : > { %v693_v27 = vrot.slane %v424_v22, 1 }
  0x7d   : > { %v2257_v40 = vpop.permute.xlu2 %857  ;;  %1299 = vmatpush.bf16.msra.mxu0 %v1910_v45  ;;  %1918 = vmatpush.bf16.msra.mxu1 %v1910_v45 }
  0x7e   : > { %1919 = vmatpush.bf16.msra.mxu2 %v1910_v45  ;;  %1920 = vmatpush.bf16.msra.mxu3 %v1910_v45  ;;  %v592_v45 = vshll.u32 %v424_v22, 16  ;;  %v2373_v22 = vld [vmem:[%s2040_s21 + $0xa8] sm:$0xff] }
  0x7f   : > { %v597_v4 = vshrl.u32 %v2373_v22, 16 }
  0x80   : > { %795 = vrot.lane.b32.xlu1 %v2159_v38, %s1987_s27 }
  0x83   : > { %789 = vrot.lane.b32.xlu0 %v2093_v57, %s1987_s27  ;;  %867 = vrot.lane.b32.xlu2 %v2248_v37, %s1986_s26  ;;  %v575_v57 = vshll.u32 %v2268_v50, 16 }
  0x85   : > { %v2275_v53 = vpop.permute.xlu2 %628  ;;  %v577_v62 = vrot.slane %v575_v57, 1  ;;  %v594_v57 = vrot.slane %v592_v45, 1 }
  0x87   : > { %v578_v10 = vor.u32 %v577_v62, %v573_v60  ;;  %v2343_v62 = vld [vmem:[%s2040_s21 + $0x84] sm:$0xff] }
  0x88   : > { %861 = vrot.lane.b32.xlu1 %v2084_v47, %s1986_s26  ;;  %v563_v20 = vshll.u32 %v2343_v62, 16 }
  0x89   : > { %v2295_v19 = vsel %vm427_vm1, %v578_v10, %v582_v11 }
  0x8a   : > { %v821_v59 = vpop.permute.xlu1 %820  ;;  %v565_v36 = vrot.slane %v563_v20, 1 }
  0x8b   : > { %830 = vrot.lane.b32.xlu0 %v2180_v58, %s1983_s23  ;;  %943 = vrot.lane.b32.xlu2 %v2120_v13, %s1988_s28 }
  0x8d   : > { %v621_v6 = vpop.permute.xlu0 %620  ;;  %v2287_v12 = vpop.permute.xlu2 %740 }
  0x8e   : > { %v973_v33 = vsel %vm971_vm3, %v2047_v2, %v621_v6  ;;  %v585_v2 = vshrl.u32 %v2301_v26, 16 }
  0x8f   : > { %v1006_v43 = vsel %vm1004_vm4, %v973_v33, %v2242_v31  ;;  %v561_v33 = vshrl.u32 %v2343_v62, 16 }
  0x90   : > { %914 = vrot.lane.b32.xlu1 %v2281_v8, %s1989_s29  ;;  %v1039_v49 = vsel %vm1037_vm5, %v1006_v43, %v2222_v24  ;;  %v590_v52 = vor.u32 %v589_v44, %v585_v2  ;;  %v2365_v2 = vsel %vm652_vm0, %v692_v21, %v693_v27  ;;  %v289_v44 = vld [vmem:[%s2040_s21 + $0xb0] sm:$0x1] }
  0x91   : > { %v566_v45 = vor.u32 %v565_v36, %v561_v33  ;;  %v981_v33 = vsel %vm971_vm3, %v2084_v47, %v2275_v53  ;;  %v686_v53 = vrot.slane %v2343_v62, 1 }
  0x92   : > { %v2289_v14 = vpop.permute.xlu1 %624  ;;  %v2340_v24 = vsel %vm427_vm1, %v590_v52, %v594_v57 }
  0x93   : > { %908 = vrot.lane.b32.xlu0 %v2103_v63, %s1989_s29  ;;  %644 = vrot.lane.b32.xlu2 %v2295_v19, %s1984_s24 }
  0x95   : > { %v2298_v23 = vpop.permute.xlu0 %622  ;;  %v2313_v35 = vpop.permute.xlu2 %793 }
  0x98   : > { %638 = vrot.lane.b32.xlu1 %v2192_v32, %s1984_s24 }
  0x9a   : > { %v2316_v41 = vpop.permute.xlu1 %626 }
  0x9b   : > { %949 = vrot.lane.b32.xlu0 %v2311_v34, %s1988_s28  ;;  %756 = vrot.lane.b32.xlu2 %v2204_v9, %s1982_s22 }
  0x9d   : > { %v786_v46 = vpop.permute.xlu0 %785  ;;  %v2333_v54 = vpop.permute.xlu2 %859 }
  0x9e   : > { %v1072_v31 = vsel %vm1070_vm6, %v1039_v49, %v786_v46  ;;  %v570_v46 = vrot.slane %v568_v39, 1  ;;  %v409_v49 = vunpack.c.l.b16 %v289_v44  ;;  %v695_v44 = vrot.slane %v2373_v22, 1 }
  0x9f   : > { %v1105_v56 = vsel %vm1103_vm7, %v1072_v31, %v821_v59 }
  0xa0   : > { %725 = vrot.lane.b32.xlu1 %v2324_v48, %s1985_s25  ;;  %v1138_v6 = vsel %vm1136_vm8, %v1105_v56, %v2257_v40  ;;  %v2380_v57 = vsel %vm427_vm1, %v566_v45, %v570_v46  ;;  %v425_v55 = vpack.c.b16 %v409_v49, %v409_v49  ;;  %v599_v56 = vshll.u32 %v2373_v22, 16 }
  0xa2   : > { %v940_v60 = vpop.permute.xlu1 %939  ;;  %v696_v45 = vrot.slane %v425_v55, 1 }
  0xa3   : > { %719 = vrot.lane.b32.xlu0 %v2215_v15, %s1985_s25  ;;  %809 = vrot.lane.b32.xlu2 %v2340_v24, %s1987_s27 }
  0xa5   : > { %v905_v10 = vpop.permute.xlu0 %904  ;;  %v2357_v40 = vpop.permute.xlu2 %912 }
  0xa6   : > { %v1171_v59 = vsel %vm1169_vm9, %v1138_v6, %v905_v10  ;;  %v601_v6 = vrot.slane %v599_v56, 1  ;;  %v604_v10 = vshll.u32 %v425_v55, 16  ;;  %v687_v56 = vrot.slane %v2351_v16, 1 }
  0xa7   : > { %v1204_v11 = vsel %vm1202_vm10, %v1171_v59, %v940_v60 }
  0xa8   : > { %1873 = vmatmul.msk.bf16.vlgmr.msra.gmra.mxu0 %vm1255_vm11, %v1204_v11  ;;  %803 = vrot.lane.b32.xlu1 %v2227_v25, %s1987_s27  ;;  %v602_v20 = vor.u32 %v601_v6, %v597_v4  ;;  %v606_v21 = vrot.slane %v604_v10, 1 }
  0xaa   : > { %v710_v28 = vpop.permute.xlu1 %709 }
  0xab   : > { %762 = vrot.lane.b32.xlu0 %v2301_v26, %s1982_s22  ;;  %875 = vrot.lane.b32.xlu2 %v2343_v62, %s1986_s26  ;;  %v1014_v39 = vsel %vm1004_vm4, %v981_v33, %v710_v28 }
  0xad   : > { %v704_v43 = vpop.permute.xlu0 %703  ;;  %v2375_v31 = vpop.permute.xlu2 %636 }
  0xb0   : > { %844 = vrot.lane.b32.xlu1 %v2365_v2, %s1983_s23 }
  0xb2   : > { %v788_v52 = vpop.permute.xlu1 %787 }
  0xb3   : > { %838 = vrot.lane.b32.xlu0 %v2240_v1, %s1983_s23  ;;  %922 = vrot.lane.b32.xlu2 %v2380_v57, %s1989_s29 }
  0xb5   : > { %v747_v60 = vpop.permute.xlu0 %746  ;;  %v2388_v59 = vpop.permute.xlu2 %801 }
  0xb6   : > { %v1047_v46 = vsel %vm1037_vm5, %v1014_v39, %v747_v60  ;;  %v2418_v60 = vsel %vm652_vm0, %v695_v44, %v696_v45 }
  0xb7   : > { %v1080_v28 = vsel %vm1070_vm6, %v1047_v46, %v2313_v35  ;;  %v2430_v35 = vsel %vm652_vm0, %v686_v53, %v687_v56 }
  0xb8   : > { %632 = vrot.lane.b32.xlu1 %v2159_v38, %s1984_s24  ;;  %v2400_v38 = vsel %vm427_vm1, %v602_v20, %v606_v21 }
  0xba   : > { %v829_v11 = vpop.permute.xlu1 %828 }
  0xbb   : > { %881 = vrot.lane.b32.xlu0 %v2373_v22, %s1986_s26  ;;  %713 = vrot.lane.b32.xlu2 %v2180_v58, %s1985_s25  ;;  %v975_v58 = vsel %vm971_vm3, %v2043_v0, %v2298_v23  ;;  %v1113_v4 = vsel %vm1103_vm7, %v1080_v28, %v829_v11 }
  0xbd   : > { %v823_v27 = vpop.permute.xlu0 %822  ;;  %v2402_v36 = vpop.permute.xlu2 %630 }
  0xc0   : > { %707 = vrot.lane.b32.xlu1 %v2187_v61, %s1985_s25  ;;  %v1008_v61 = vsel %vm1004_vm4, %v975_v58, %v704_v43 }
  0xc1   : > { %v1041_v0 = vsel %vm1037_vm5, %v1008_v61, %v2287_v12 }
  0xc2   : > { %v907_v49 = vpop.permute.xlu1 %906  ;;  %v1074_v43 = vsel %vm1070_vm6, %v1041_v0, %v788_v52 }
  0xc3   : > { %928 = vrot.lane.b32.xlu0 %v2400_v38, %s1989_s29  ;;  %744 = vrot.lane.b32.xlu2 %v2084_v47, %s1982_s22  ;;  %v1107_v6 = vsel %vm1103_vm7, %v1074_v43, %v823_v27  ;;  %v292_v43 = vld [vmem:[%s2040_s21 + $0xbc] sm:$0x1] }
  0xc4   : > { %v1140_v52 = vsel %vm1136_vm8, %v1107_v6, %v2333_v54  ;;  %v2504_v6 = vld [vmem:[%s2040_s21 + $0xb4] sm:$0xff] }
  0xc5   : > { %v866_v55 = vpop.permute.xlu0 %865  ;;  %v2432_v16 = vpop.permute.xlu2 %711  ;;  %v1173_v11 = vsel %vm1169_vm9, %v1140_v52, %v907_v49 }
  0xc6   : > { %v1146_v23 = vsel %vm1136_vm8, %v1113_v4, %v866_v55 }
  0xc7   : > { %v1179_v47 = vsel %vm1169_vm9, %v1146_v23, %v2357_v40 }
  0xc8   : > { %963 = vrot.lane.b32.xlu1 %v2418_v60, %s1988_s28 }
  0xca   : > { %v948_v10 = vpop.permute.xlu1 %947 }
  0xcb   : > { %957 = vrot.lane.b32.xlu0 %v2430_v35, %s1988_s28  ;;  %v1212_v12 = vsel %vm1202_vm10, %v1179_v47, %v948_v10  ;;  %797 = vrot.lane.b32.xlu2 %v2281_v8, %s1987_s27  ;;  %v410_v10 = vunpack.c.l.b16 %v292_v43  ;;  %v977_v47 = vsel %vm971_vm3, %v2051_v5, %v2289_v14  ;;  %v611_v5 = vshll.u32 %v2504_v6, 16 }
  0xcc   : > { %1877 = vmatmul.msk.bf16.vlgmr.msra.gmra.mxu1 %vm1255_vm11, %v1212_v12 }
  0xcd   : > { %v942_v20 = vpop.permute.xlu0 %941  ;;  %v2450_v40 = vpop.permute.xlu2 %748 }
  0xce   : > { %v1206_v21 = vsel %vm1202_vm10, %v1173_v11, %v942_v20  ;;  %v983_v20 = vsel %vm971_vm3, %v2109_v3, %v2402_v36 }
  0xcf   : > { %1874 = vmatmul.msk.bf16.gmra.mxu0 %vm1255_vm11, %v1206_v21 }
  0xd0   : > { %791 = vrot.lane.b32.xlu1 %v2103_v63, %s1987_s27  ;;  %v989_v63 = vsel %vm971_vm3, %v2148_v30, %v2375_v31 }
  0xd2   : > { %v755_v27 = vpop.permute.xlu1 %754 }
  0xd3   : > { %750 = vrot.lane.b32.xlu0 %v2248_v37, %s1982_s22  ;;  %863 = vrot.lane.b32.xlu2 %v2109_v3, %s1986_s26  ;;  %v613_v3 = vrot.slane %v611_v5, 1 }
  0xd5   : > { %v718_v54 = vpop.permute.xlu0 %717  ;;  %v825_v33 = vpop.permute.xlu2 %824 }
  0xd6   : > { %v1022_v46 = vsel %vm1004_vm4, %v989_v63, %v718_v54  ;;  %v1016_v54 = vsel %vm1004_vm4, %v983_v20, %v2432_v16 }
  0xd8   : > { %832 = vrot.lane.b32.xlu1 %v2311_v34, %s1983_s23 }
  0xda   : > { %v874_v39 = vpop.permute.xlu1 %873 }
  0xdb   : > { %826 = vrot.lane.b32.xlu0 %v2120_v13, %s1983_s23  ;;  %916 = vrot.lane.b32.xlu2 %v2174_v51, %s1989_s29  ;;  %v1055_v13 = vsel %vm1037_vm5, %v1022_v46, %v755_v27  ;;  %v426_v27 = vpack.c.b16 %v410_v10, %v410_v10  ;;  %v609_v46 = vshrl.u32 %v2504_v6, 16 }
  0xdc   : > { %v1088_v31 = vsel %vm1070_vm6, %v1055_v13, %v2388_v59  ;;  %v1049_v13 = vsel %vm1037_vm5, %v1016_v54, %v2450_v40 }
  0xdd   : > { %v837_v44 = vpop.permute.xlu0 %836  ;;  %v2467_v45 = vpop.permute.xlu2 %867  ;;  %v616_v36 = vshll.u32 %v426_v27, 16 }
  0xde   : > { %v1121_v61 = vsel %vm1103_vm7, %v1088_v31, %v837_v44 }
  0xdf   : > { %v1154_v56 = vsel %vm1136_vm8, %v1121_v61, %v874_v39  ;;  %v614_v61 = vor.u32 %v613_v3, %v609_v46 }
  0xe0   : > { %910 = vrot.lane.b32.xlu1 %v2130_v17, %s1989_s29 }
  0xe2   : > { %v706_v49 = vpop.permute.xlu1 %705 }
  0xe3   : > { %869 = vrot.lane.b32.xlu0 %v2148_v30, %s1986_s26  ;;  %640 = vrot.lane.b32.xlu2 %v2227_v25, %s1984_s24  ;;  %v1010_v12 = vsel %vm1004_vm4, %v977_v47, %v706_v49 }
  0xe5   : > { %v921_v58 = vpop.permute.xlu0 %920  ;;  %v944_v17 = vpop.permute.xlu2 %943 }
  0xe6   : > { %v1187_v28 = vsel %vm1169_vm9, %v1154_v56, %v921_v58 }
  0xe8   : > { %951 = vrot.lane.b32.xlu1 %v2201_v7, %s1988_s28 }
  0xea   : > { %v743_v53 = vpop.permute.xlu1 %742 }
  0xeb   : > { %945 = vrot.lane.b32.xlu0 %v2145_v29, %s1988_s28  ;;  %727 = vrot.lane.b32.xlu2 %v2365_v2, %s1985_s25  ;;  %v1043_v52 = vsel %vm1037_vm5, %v1010_v12, %v743_v53  ;;  %v618_v53 = vrot.slane %v616_v36, 1 }
  0xed   : > { %v956_v55 = vpop.permute.xlu0 %955  ;;  %v2490_v59 = vpop.permute.xlu2 %644 }
  0xee   : > { %v1220_v25 = vsel %vm1202_vm10, %v1187_v28, %v956_v55  ;;  %v2548_v28 = vsel %vm427_vm1, %v614_v61, %v618_v53 }
  0xef   : > { %1881 = vmatmul.msk.bf16.vlgmr.msra.gmra.mxu2 %vm1255_vm11, %v1220_v25 }
  0xf0   : > { %721 = vrot.lane.b32.xlu1 %v2240_v1, %s1985_s25 }
  0xf2   : > { %v796_v29 = vpop.permute.xlu1 %795 }
  0xf3   : > { %646 = vrot.lane.b32.xlu0 %v2340_v24, %s1984_s24  ;;  %805 = vrot.lane.b32.xlu2 %v2380_v57, %s1987_s27  ;;  %v1082_v16 = vsel %vm1070_vm6, %v1049_v13, %v796_v29  ;;  %v698_v29 = vrot.slane %v2504_v6, 1 }
  0xf5   : > { %v790_v4 = vpop.permute.xlu0 %789  ;;  %v2498_v0 = vpop.permute.xlu2 %756 }
  0xf6   : > { %v1076_v21 = vsel %vm1070_vm6, %v1043_v52, %v790_v4 }
  0xf7   : > { %v1109_v39 = vsel %vm1103_vm7, %v1076_v21, %v825_v33 }
  0xf8   : > { %764 = vrot.lane.b32.xlu1 %v2373_v22, %s1982_s22 }
  0xfa   : > { %v862_v23 = vpop.permute.xlu1 %861 }
  0xfb   : > { %758 = vrot.lane.b32.xlu0 %v2343_v62, %s1982_s22  ;;  %846 = vrot.lane.b32.xlu2 %v2418_v60, %s1983_s23  ;;  %v1142_v44 = vsel %vm1136_vm8, %v1109_v39, %v862_v23 }
  0xfd   : > { %v831_v1 = vpop.permute.xlu0 %830  ;;  %v2515_v11 = vpop.permute.xlu2 %809 }
  0xfe   : > { %v1115_v31 = vsel %vm1103_vm7, %v1082_v16, %v831_v1 }
 0x100   : > { %840 = vrot.lane.b32.xlu1 %v2430_v35, %s1983_s23 }
 0x102   : > { %v915_v14 = vpop.permute.xlu1 %914 }
 0x103   : > { %811 = vrot.lane.b32.xlu0 %v2400_v38, %s1987_s27  ;;  %634 = vrot.lane.b32.xlu2 %v2281_v8, %s1984_s24  ;;  %v1148_v8 = vsel %vm1136_vm8, %v1115_v31, %v2467_v45  ;;  %v699_v45 = vrot.slane %v426_v27, 1  ;;  %v1908_v31 = vld [vmem:[%s2040_s21 + $0xc0] sm:$0xff] }
 0x104   : > { %v1181_v40 = vsel %vm1169_vm9, %v1148_v8, %v915_v14  ;;  %v776_v53 = vshll.u32 %v1908_v31, 16 }
 0x105   : > { %v909_v63 = vpop.permute.xlu0 %908  ;;  %v2539_v33 = vpop.permute.xlu2 %875  ;;  %v2560_v43 = vsel %vm652_vm0, %v698_v29, %v699_v45 }
 0x106   : > { %v1175_v49 = vsel %vm1169_vm9, %v1142_v44, %v909_v63 }
 0x107   : > { %v1208_v58 = vsel %vm1202_vm10, %v1175_v49, %v944_v17 }
 0x108   : > { %1875 = vmatmul.msk.bf16.gmra.mxu0 %vm1255_vm11, %v1208_v58  ;;  %883 = vrot.lane.b32.xlu1 %v2504_v6, %s1986_s26  ;;  %v295_v58 = vld [vmem:[%s2040_s21 + $0xc8] sm:$0x1] }
 0x10a   : > { %v639_v56 = vpop.permute.xlu1 %638 }
 0x10b   : > { %877 = vrot.lane.b32.xlu0 %v2268_v50, %s1986_s26  ;;  %715 = vrot.lane.b32.xlu2 %v2311_v34, %s1985_s25 }
 0x10d   : > { %v950_v17 = vpop.permute.xlu0 %949  ;;  %v923_v25 = vpop.permute.xlu2 %922 }
 0x10e   : > { %v1214_v55 = vsel %vm1202_vm10, %v1181_v40, %v950_v17  ;;  %v774_v40 = vshrl.u32 %v1908_v31, 16  ;;  %v778_v17 = vrot.slane %v776_v53, 1 }
 0x10f   : > { %1878 = vmatmul.msk.bf16.gmra.mxu1 %vm1255_vm11, %v1214_v55 }
 0x110   : > { %930 = vrot.lane.b32.xlu1 %v2548_v28, %s1989_s29 }
 0x112   : > { %v726_v4 = vpop.permute.xlu1 %725 }
 0x113   : > { %924 = vrot.lane.b32.xlu0 %v2295_v19, %s1989_s29  ;;  %752 = vrot.lane.b32.xlu2 %v2148_v30, %s1982_s22 }
 0x115   : > { %v720_v23 = vpop.permute.xlu0 %719  ;;  %v2566_v34 = vpop.permute.xlu2 %713 }
 0x118   : > { %965 = vrot.lane.b32.xlu1 %v2560_v43, %s1988_s28 }
 0x11a   : > { %v804_v1 = vpop.permute.xlu1 %803 }
 0x11b   : > { %959 = vrot.lane.b32.xlu0 %v2324_v48, %s1988_s28  ;;  %871 = vrot.lane.b32.xlu2 %v2163_v42, %s1986_s26 }
 0x11d   : > { %v763_v10 = vpop.permute.xlu0 %762  ;;  %v2574_v47 = vpop.permute.xlu2 %744 }
 0x120   : > { %834 = vrot.lane.b32.xlu1 %v2201_v7, %s1983_s23 }
 0x122   : > { %v845_v12 = vpop.permute.xlu1 %844 }
 0x123   : > { %799 = vrot.lane.b32.xlu0 %v2174_v51, %s1987_s27  ;;  %642 = vrot.lane.b32.xlu2 %v2380_v57, %s1984_s24 }
 0x125   : > { %v2584_v30 = vpop.f32.mrf.mxu0  ;;  %v839_v52 = vpop.permute.xlu0 %838 }
 0x126   : > { %v1381_v7 = vpack.c.bf16 %v2584_v30, %v2584_v30  ;;  %v2594_v51 = vpop.permute.xlu2 %797 }
 0x128   : > { %1414 = vst.msk [vmem:[%s2582_s13] sm:$0xf] %vm1413_vm12, %v1381_v7  ;;  %953 = vrot.lane.b32.xlu1 %v2215_v15, %s1988_s28  ;;  %v997_v15 = vsel %vm971_vm3, %v2268_v50, %v2490_v59 }
 0x12a   : > { %v2596_v20 = vpop.permute.xlu1 %632 }
 0x12b   : > { %918 = vrot.lane.b32.xlu0 %v2192_v32, %s1989_s29  ;;  %729 = vrot.lane.b32.xlu2 %v2418_v60, %s1985_s25  ;;  %v991_v32 = vsel %vm971_vm3, %v2163_v42, %v639_v56  ;;  %v1030_v60 = vsel %vm1004_vm4, %v997_v15, %v726_v4  ;;  %v985_v7 = vsel %vm971_vm3, %v2133_v18, %v2596_v20 }
 0x12c   : > { %v1024_v14 = vsel %vm1004_vm4, %v991_v32, %v720_v23  ;;  %v1063_v59 = vsel %vm1037_vm5, %v1030_v60, %v763_v10  ;;  %v779_v23 = vor.u32 %v778_v17, %v774_v40  ;;  %v1018_v15 = vsel %vm1004_vm4, %v985_v7, %v2566_v34  ;;  %v1957_v60 = vld [vmem:[%s2040_s21 + $0x24] sm:$0xff] }
 0x12d   : > { %v2600_v21 = vpop.f32.mrf.mxu0  ;;  %v882_v27 = vpop.permute.xlu0 %881  ;;  %v1057_v39 = vsel %vm1037_vm5, %v1024_v14, %v2498_v0  ;;  %v1096_v42 = vsel %vm1070_vm6, %v1063_v59, %v2515_v11  ;;  %v979_v59 = vsel %vm971_vm3, %v1957_v60, %v2316_v41 }
 0x12e   : > { %v1382_v5 = vpack.c.bf16 %v2600_v21, %v2600_v21  ;;  %v2613_v57 = vpop.permute.xlu2 %863  ;;  %v1090_v44 = vsel %vm1070_vm6, %v1057_v39, %v804_v1  ;;  %v1129_v46 = vsel %vm1103_vm7, %v1096_v42, %v845_v12  ;;  %v298_v42 = vld [vmem:[%s2040_s21 + $0xd4] sm:$0x1] }
 0x12f   : > { %v1123_v63 = vsel %vm1103_vm7, %v1090_v44, %v839_v52 }
 0x130   : > { %1415 = vst.msk [vmem:[%s2582_s13 + $0x4] sm:$0xf] %vm1413_vm12, %v1382_v5  ;;  %723 = vrot.lane.b32.xlu1 %v2430_v35, %s1985_s25  ;;  %v1156_v0 = vsel %vm1136_vm8, %v1123_v63, %v2539_v33  ;;  %v771_v33 = vunpack.c.l.b16 %v295_v58 }
 0x131   : > { %v1189_v13 = vsel %vm1169_vm9, %v1156_v0, %v923_v25  ;;  %v817_v25 = vrot.slane %v1908_v31, 1  ;;  %v890_v0 = vunpack.c.l.b16 %v298_v42 }
 0x132   : > { %v2618_v54 = vpop.permute.xlu1 %707  ;;  %v772_v61 = vpack.c.b16 %v771_v33, %v771_v33 }
 0x133   : > { %648 = vrot.lane.b32.xlu0 %v2400_v38, %s1984_s24  ;;  %807 = vrot.lane.b32.xlu2 %v2295_v19, %s1987_s27  ;;  %v1162_v38 = vsel %vm1136_vm8, %v1129_v46, %v882_v27 }
 0x134   : > { %v818_v29 = vrot.slane %v772_v61, 1 }
 0x135   : > { %v929_v35 = vpop.permute.xlu0 %928 }
 0x136   : > { %v1195_v3 = vsel %vm1169_vm9, %v1162_v38, %v929_v35  ;;  %v2639_v19 = vpop.permute.xlu2 %916  ;;  %v819_v52 = vsel %vm652_vm0, %v817_v25, %v818_v29  ;;  %v1909_v38 = vld [vmem:[%s2040_s21 + $0xcc] sm:$0xff] }
 0x138   : > { %766 = vrot.lane.b32.xlu1 %v2504_v6, %s1982_s22 }
 0x13a   : > { %v964_v36 = vpop.permute.xlu1 %963 }
 0x13b   : > { %760 = vrot.lane.b32.xlu0 %v2268_v50, %s1982_s22  ;;  %v1228_v11 = vsel %vm1202_vm10, %v1195_v3, %v964_v36  ;;  %848 = vrot.lane.b32.xlu2 %v2560_v43, %s1983_s23 }
 0x13c   : > { %1885 = vmatmul.msk.bf16.vlgmr.msra.gmra.mxu3 %vm1255_vm11, %v1228_v11 }
 0x13d   : > { %v958_v49 = vpop.permute.xlu0 %957 }
 0x13e   : > { %v1222_v16 = vsel %vm1202_vm10, %v1189_v13, %v958_v49  ;;  %v2656_v56 = vpop.permute.xlu2 %640  ;;  %v895_v13 = vshll.u32 %v1909_v38, 16 }
 0x13f   : > { %1882 = vmatmul.msk.bf16.gmra.mxu2 %vm1255_vm11, %v1222_v16 }
 0x140   : > { %842 = vrot.lane.b32.xlu1 %v2324_v48, %s1983_s23  ;;  %v781_v48 = vshll.u32 %v772_v61, 16 }
 0x142   : > { %v792_v50 = vpop.permute.xlu1 %791  ;;  %v783_v1 = vrot.slane %v781_v48, 1 }
 0x143   : > { %813 = vrot.lane.b32.xlu0 %v2548_v28, %s1987_s27  ;;  %926 = vrot.lane.b32.xlu2 %v2340_v24, %s1989_s29 }
 0x144   : > { %v784_v5 = vsel %vm427_vm1, %v779_v23, %v783_v1 }
 0x145   : > { %v751_v8 = vpop.permute.xlu0 %750 }
 0x146   : > { %v2677_v27 = vpop.permute.xlu2 %727  ;;  %v1051_v14 = vsel %vm1037_vm5, %v1018_v15, %v751_v8 }
 0x147   : > { %v1084_v39 = vsel %vm1070_vm6, %v1051_v14, %v2594_v51 }
 0x148   : > { %885 = vrot.lane.b32.xlu1 %v1908_v31, %s1986_s26 }
 0x149   : > { %v2661_v55 = vpop.f32.mrf.mxu1 }
 0x14a   : > { %v1389_v45 = vpack.c.bf16 %v2661_v55, %v2661_v55  ;;  %v833_v4 = vpop.permute.xlu1 %832 }
 0x14b   : > { %879 = vrot.lane.b32.xlu0 %v2301_v26, %s1986_s26  ;;  %967 = vrot.lane.b32.xlu2 %v819_v52, %s1988_s28  ;;  %v1117_v41 = vsel %vm1103_vm7, %v1084_v39, %v833_v4 }
 0x14c   : > { %1422 = vst.msk [vmem:[%s2582_s13 + $0x20] sm:$0xf] %vm1413_vm12, %v1389_v45  ;;  %v2669_v24 = vpop.f32.mrf.mxu0 }
 0x14d   : > { %v1383_v10 = vpack.c.bf16 %v2669_v24, %v2669_v24  ;;  %v827_v12 = vpop.permute.xlu0 %826 }
 0x14e   : > { %v2717_v51 = vpop.permute.xlu2 %805 }
 0x14f   : > { %1416 = vst.msk [vmem:[%s2582_s13 + $0x8] sm:$0xf] %vm1413_vm12, %v1383_v10 }
 0x150   : > { %961 = vrot.lane.b32.xlu1 %v2365_v2, %s1988_s28  ;;  %v1012_v2 = vsel %vm1004_vm4, %v979_v59, %v2618_v54  ;;  %v993_v59 = vsel %vm971_vm3, %v2204_v9, %v2656_v56 }
 0x151   : > { %v2687_v32 = vpop.f32.mrf.mxu1  ;;  %v1045_v63 = vsel %vm1037_vm5, %v1012_v2, %v2574_v47 }
 0x152   : > { %v1390_v18 = vpack.c.bf16 %v2687_v32, %v2687_v32  ;;  %v911_v20 = vpop.permute.xlu1 %910  ;;  %v1078_v46 = vsel %vm1070_vm6, %v1045_v63, %v792_v50 }
 0x153   : > { %932 = vrot.lane.b32.xlu0 %v784_v5, %s1989_s29  ;;  %768 = vrot.lane.b32.xlu2 %v1908_v31, %s1982_s22  ;;  %v1111_v3 = vsel %vm1103_vm7, %v1078_v46, %v827_v12  ;;  %v936_v31 = vrot.slane %v1909_v38, 1 }
 0x154   : > { %1423 = vst.msk [vmem:[%s2582_s13 + $0x24] sm:$0xf] %vm1413_vm12, %v1390_v18  ;;  %v2700_v34 = vpop.f32.mrf.mxu0  ;;  %v1144_v49 = vsel %vm1136_vm8, %v1111_v3, %v2613_v57 }
 0x155   : > { %v1384_v35 = vpack.c.bf16 %v2700_v34, %v2700_v34  ;;  %v870_v44 = vpop.permute.xlu0 %869  ;;  %v1177_v58 = vsel %vm1169_vm9, %v1144_v49, %v911_v20 }
 0x156   : > { %v1150_v54 = vsel %vm1136_vm8, %v1117_v41, %v870_v44  ;;  %v847_v53 = vpop.permute.xlu2 %846 }
 0x157   : > { %1417 = vst.msk [vmem:[%s2582_s13 + $0xc] sm:$0xf] %vm1413_vm12, %v1384_v35  ;;  %v1183_v11 = vsel %vm1169_vm9, %v1150_v54, %v2639_v19  ;;  %v897_v19 = vrot.slane %v895_v13, 1 }
 0x158   : > { %731 = vrot.lane.b32.xlu1 %v2560_v43, %s1985_s25  ;;  %v891_v43 = vpack.c.b16 %v890_v0, %v890_v0 }
 0x15a   : > { %v952_v36 = vpop.permute.xlu1 %951  ;;  %v900_v50 = vshll.u32 %v891_v43, 16  ;;  %v937_v57 = vrot.slane %v891_v43, 1 }
 0x15b   : > { %650 = vrot.lane.b32.xlu0 %v2548_v28, %s1984_s24  ;;  %v1216_v47 = vsel %vm1202_vm10, %v1183_v11, %v952_v36  ;;  %887 = vrot.lane.b32.xlu2 %v1909_v38, %s1986_s26  ;;  %v893_v28 = vshrl.u32 %v1909_v38, 16 }
 0x15c   : > { %1879 = vmatmul.msk.bf16.gmra.mxu1 %vm1255_vm11, %v1216_v47  ;;  %v902_v40 = vrot.slane %v900_v50, 1  ;;  %v938_v48 = vsel %vm652_vm0, %v936_v31, %v937_v57 }
 0x15d   : > { %v946_v16 = vpop.permute.xlu0 %945  ;;  %v898_v8 = vor.u32 %v897_v19, %v893_v28 }
 0x15e   : > { %v1210_v33 = vsel %vm1202_vm10, %v1177_v58, %v946_v16  ;;  %v635_v45 = vpop.permute.xlu2 %634 }
 0x15f   : > { %1876 = vmatmul.msk.bf16.gmra.mxu0 %vm1255_vm11, %v1210_v33  ;;  %v903_v25 = vsel %vm427_vm1, %v898_v8, %v902_v40  ;;  %v987_v16 = vsel %vm971_vm3, %v2248_v37, %v635_v45 }
 0x160   : > { %850 = vrot.lane.b32.xlu1 %v819_v52, %s1983_s23 }
 0x162   : > { %v722_v61 = vpop.permute.xlu1 %721 }
 0x163   : > { %815 = vrot.lane.b32.xlu0 %v784_v5, %s1987_s27  ;;  %v1026_v41 = vsel %vm1004_vm4, %v993_v59, %v722_v61 }
 0x165   : > { %v647_v17 = vpop.permute.xlu0 %646 }
 0x166   : > { %v716_v52 = vpop.permute.xlu2 %715  ;;  %v999_v18 = vsel %vm971_vm3, %v2301_v26, %v647_v17 }
 0x167   : > { %v1032_v2 = vsel %vm1004_vm4, %v999_v18, %v2677_v27  ;;  %v1020_v19 = vsel %vm1004_vm4, %v987_v16, %v716_v52 }
 0x168   : > { %969 = vrot.lane.b32.xlu1 %v938_v48, %s1988_s28 }
 0x16a   : > { %v765_v29 = vpop.permute.xlu1 %764 }
 0x16b   : > { %934 = vrot.lane.b32.xlu0 %v903_v25, %s1989_s29  ;;  %v1065_v39 = vsel %vm1037_vm5, %v1032_v2, %v765_v29 }
 0x16d   : > { %v759_v4 = vpop.permute.xlu0 %758 }
 0x16e   : > { %v753_v20 = vpop.permute.xlu2 %752  ;;  %v1059_v63 = vsel %vm1037_vm5, %v1026_v41, %v759_v4 }
 0x16f   : > { %v1092_v27 = vsel %vm1070_vm6, %v1059_v63, %v2717_v51  ;;  %v1053_v61 = vsel %vm1037_vm5, %v1020_v19, %v753_v20 }
 0x172   : > { %v2739_v23 = vpop.f32.mrf.mxu2  ;;  %v841_v1 = vpop.permute.xlu1 %840 }
 0x173   : > { %v1397_v10 = vpack.c.bf16 %v2739_v23, %v2739_v23  ;;  %v1125_v0 = vsel %vm1103_vm7, %v1092_v27, %v841_v1 }
 0x175   : > { %1430 = vst.msk [vmem:[%s2582_s13 + $0x40] sm:$0xf] %vm1413_vm12, %v1397_v10  ;;  %v812_v12 = vpop.permute.xlu0 %811 }
 0x176   : > { %v1098_v35 = vsel %vm1070_vm6, %v1065_v39, %v812_v12  ;;  %v872_v9 = vpop.permute.xlu2 %871 }
 0x177   : > { %v1131_v54 = vsel %vm1103_vm7, %v1098_v35, %v847_v53 }
 0x17a   : > { %v2745_v7 = vpop.f32.mrf.mxu2  ;;  %v884_v5 = vpop.permute.xlu1 %883 }
 0x17b   : > { %v1398_v15 = vpack.c.bf16 %v2745_v7, %v2745_v7  ;;  %v1164_v56 = vsel %vm1136_vm8, %v1131_v54, %v884_v5 }
 0x17d   : > { %1431 = vst.msk [vmem:[%s2582_s13 + $0x44] sm:$0xf] %vm1413_vm12, %v1398_v15  ;;  %v878_v14 = vpop.permute.xlu0 %877 }
 0x17e   : > { %v1158_v36 = vsel %vm1136_vm8, %v1125_v0, %v878_v14  ;;  %v643_v28 = vpop.permute.xlu2 %642 }
 0x17f   : > { %v995_v14 = vsel %vm971_vm3, %v2343_v62, %v643_v28 }
 0x182   : > { %v931_v60 = vpop.permute.xlu1 %930 }
 0x183   : > { %v1197_v46 = vsel %vm1169_vm9, %v1164_v56, %v931_v60 }
 0x185   : > { %v2760_v44 = vpop.f32.mrf.mxu0  ;;  %v925_v42 = vpop.permute.xlu0 %924 }
 0x186   : > { %v1385_v26 = vpack.c.bf16 %v2760_v44, %v2760_v44  ;;  %v1191_v47 = vsel %vm1169_vm9, %v1158_v36, %v925_v42  ;;  %v730_v40 = vpop.permute.xlu2 %729 }
 0x188   : > { %1418 = vst.msk [vmem:[%s2582_s13 + $0x10] sm:$0xf] %vm1413_vm12, %v1385_v26 }
 0x18a   : > { %v966_v38 = vpop.permute.xlu1 %965 }
 0x18b   : > { %v1230_v3 = vsel %vm1202_vm10, %v1197_v46, %v966_v38 }
 0x18c   : > { %v2776_v11 = vpop.f32.mrf.mxu1  ;;  %1886 = vmatmul.msk.bf16.gmra.mxu3 %vm1255_vm11, %v1230_v3 }
 0x18d   : > { %v1391_v49 = vpack.c.bf16 %v2776_v11, %v2776_v11  ;;  %v2782_v51 = vpop.f32.mrf.mxu0  ;;  %v960_v43 = vpop.permute.xlu0 %959 }
 0x18e   : > { %v1386_v13 = vpack.c.bf16 %v2782_v51, %v2782_v51  ;;  %v1224_v58 = vsel %vm1202_vm10, %v1191_v47, %v960_v43  ;;  %v808_v1 = vpop.permute.xlu2 %807 }
 0x18f   : > { %1424 = vst.msk [vmem:[%s2582_s13 + $0x28] sm:$0xf] %vm1413_vm12, %v1391_v49  ;;  %1883 = vmatmul.msk.bf16.gmra.mxu2 %vm1255_vm11, %v1224_v58 }
 0x190   : > { %1419 = vst.msk [vmem:[%s2582_s13 + $0x14] sm:$0xf] %vm1413_vm12, %v1386_v13 }
 0x192   : > { %v835_v33 = vpop.permute.xlu1 %834 }
 0x194   : > { %v2795_v50 = vpop.f32.mrf.mxu1 }
 0x195   : > { %v1392_v31 = vpack.c.bf16 %v2795_v50, %v2795_v50  ;;  %v800_v57 = vpop.permute.xlu0 %799 }
 0x196   : > { %v1086_v53 = vsel %vm1070_vm6, %v1053_v61, %v800_v57  ;;  %v849_v52 = vpop.permute.xlu2 %848 }
 0x197   : > { %1425 = vst.msk [vmem:[%s2582_s13 + $0x2c] sm:$0xf] %vm1413_vm12, %v1392_v31  ;;  %v1119_v37 = vsel %vm1103_vm7, %v1086_v53, %v835_v33 }
 0x198   : > { %v1152_v17 = vsel %vm1136_vm8, %v1119_v37, %v872_v9 }
 0x19a   : > { %v954_v8 = vpop.permute.xlu1 %953 }
 0x19d   : > { %v919_v48 = vpop.permute.xlu0 %918 }
 0x19e   : > { %v1185_v25 = vsel %vm1169_vm9, %v1152_v17, %v919_v48  ;;  %v927_v59 = vpop.permute.xlu2 %926 }
 0x19f   : > { %v1218_v29 = vsel %vm1202_vm10, %v1185_v25, %v954_v8 }
 0x1a0   : > { %1880 = vmatmul.msk.bf16.gmra.mxu1 %vm1255_vm11, %v1218_v29 }
 0x1a2   : > { %v724_v45 = vpop.permute.xlu1 %723 }
 0x1a3   : > { %v1028_v18 = vsel %vm1004_vm4, %v995_v14, %v724_v45 }
 0x1a5   : > { %v649_v4 = vpop.permute.xlu0 %648 }
 0x1a6   : > { %v1001_v2 = vsel %vm971_vm3, %v2373_v22, %v649_v4  ;;  %v968_v3 = vpop.permute.xlu2 %967 }
 0x1a7   : > { %v1034_v41 = vsel %vm1004_vm4, %v1001_v2, %v730_v40 }
 0x1aa   : > { %v767_v10 = vpop.permute.xlu1 %766 }
 0x1ab   : > { %v1067_v63 = vsel %vm1037_vm5, %v1034_v41, %v767_v10  ;;  %v1453_v41 = vsel %vm1004_vm4, %v2760_v44, 0.0 }
 0x1ad   : > { %v761_v12 = vpop.permute.xlu0 %760 }
 0x1ae   : > { %v1061_v20 = vsel %vm1037_vm5, %v1028_v18, %v761_v12  ;;  %v769_v57 = vpop.permute.xlu2 %768 }
 0x1af   : > { %v1094_v39 = vsel %vm1070_vm6, %v1061_v20, %v808_v1  ;;  %v1447_v20 = vsel %vm1004_vm4, %v2600_v21, 0.0 }
 0x1b2   : > { %v843_v5 = vpop.permute.xlu1 %842 }
 0x1b3   : > { %v1127_v42 = vsel %vm1103_vm7, %v1094_v39, %v843_v5  ;;  %v1451_v39 = vsel %vm1004_vm4, %v2700_v34, 0.0 }
 0x1b5   : > { %v814_v15 = vpop.permute.xlu0 %813 }
 0x1b6   : > { %v1100_v9 = vsel %vm1070_vm6, %v1067_v63, %v814_v15  ;;  %v888_v25 = vpop.permute.xlu2 %887 }
 0x1b7   : > { %v1133_v0 = vsel %vm1103_vm7, %v1100_v9, %v849_v52 }
 0x1ba   : > { %v886_v60 = vpop.permute.xlu1 %885 }
 0x1bb   : > { %v1166_v36 = vsel %vm1136_vm8, %v1133_v0, %v886_v60  ;;  %v1446_v60 = vsel %vm1004_vm4, %v2584_v30, 0.0 }
 0x1bc   : > { %v1448_v2 = vadd.f32 %v1447_v20, %v1446_v60  ;;  %v1479_v60 = vsel %vm1004_vm4, %v2745_v7, 0.0 }
 0x1bd   : > { %v880_v35 = vpop.permute.xlu0 %879 }
 0x1be   : > { %v1160_v62 = vsel %vm1136_vm8, %v1127_v42, %v880_v35 }
 0x1bf   : > { %v2818_v26 = vpop.f32.mrf.mxu3  ;;  %v1193_v22 = vsel %vm1169_vm9, %v1160_v62, %v927_v59  ;;  %v1449_v59 = vsel %vm1004_vm4, %v2669_v24, 0.0 }
 0x1c0   : > { %v1405_v54 = vpack.c.bf16 %v2818_v26, %v2818_v26  ;;  %v1450_v35 = vadd.f32 %v1449_v59, %v1448_v2 }
 0x1c2   : > { %1438 = vst.msk [vmem:[%s2582_s13 + $0x60] sm:$0xf] %vm1413_vm12, %v1405_v54  ;;  %v2827_v56 = vpop.f32.mrf.mxu2  ;;  %v962_v27 = vpop.permute.xlu1 %961  ;;  %v1452_v63 = vadd.f32 %v1451_v39, %v1450_v35  ;;  %v1455_v54 = vsel %vm1004_vm4, %v2782_v51, 0.0 }
 0x1c3   : > { %v1399_v46 = vpack.c.bf16 %v2827_v56, %v2827_v56  ;;  %v1226_v38 = vsel %vm1202_vm10, %v1193_v22, %v962_v27  ;;  %v1481_v2 = vsel %vm1004_vm4, %v2827_v56, 0.0 }
 0x1c4   : > { %1884 = vmatmul.msk.bf16.gmra.mxu2 %vm1255_vm11, %v1226_v38  ;;  %v1454_v22 = vadd.f32 %v1453_v41, %v1452_v63 }
 0x1c5   : > { %1432 = vst.msk [vmem:[%s2582_s13 + $0x48] sm:$0xf] %vm1413_vm12, %v1399_v46  ;;  %v933_v47 = vpop.permute.xlu0 %932 }
 0x1c6   : > { %v1199_v49 = vsel %vm1169_vm9, %v1166_v36, %v933_v47  ;;  %v1456_v38 = vadd.f32 %v1455_v54, %v1454_v22 }
 0x1c7   : > { %v2838_v43 = vpop.f32.mrf.mxu3  ;;  %v1232_v13 = vsel %vm1202_vm10, %v1199_v49, %v968_v3 }
 0x1c8   : > { %v1406_v58 = vpack.c.bf16 %v2838_v43, %v2838_v43  ;;  %1887 = vmatmul.msk.bf16.gmra.mxu3 %vm1255_vm11, %v1232_v13 }
 0x1ca   : > { %1439 = vst.msk [vmem:[%s2582_s13 + $0x64] sm:$0xf] %vm1413_vm12, %v1406_v58  ;;  %v2846_v16 = vpop.f32.mrf.mxu2  ;;  %v732_v33 = vpop.permute.xlu1 %731 }
 0x1cb   : > { %v1400_v28 = vpack.c.bf16 %v2846_v16, %v2846_v16  ;;  %v1483_v35 = vsel %vm1004_vm4, %v2846_v16, 0.0 }
 0x1cd   : > { %1433 = vst.msk [vmem:[%s2582_s13 + $0x4c] sm:$0xf] %vm1413_vm12, %v1400_v28  ;;  %v651_v19 = vpop.permute.xlu0 %650 }
 0x1ce   : > { %v1003_v31 = vsel %vm971_vm3, %v2504_v6, %v651_v19 }
 0x1cf   : > { %v1036_v53 = vsel %vm1004_vm4, %v1003_v31, %v732_v33  ;;  %v1461_v33 = vsel %vm1004_vm4, %v2661_v55, 0.0 }
 0x1d0   : > { %v1069_v8 = vsel %vm1037_vm5, %v1036_v53, %v769_v57  ;;  %v1463_v57 = vsel %vm1004_vm4, %v2687_v32, 0.0  ;;  %v1465_v53 = vsel %vm1004_vm4, %v2776_v11, 0.0 }
 0x1d2   : > { %v851_v61 = vpop.permute.xlu1 %850 }
 0x1d5   : > { %v816_v37 = vpop.permute.xlu0 %815 }
 0x1d6   : > { %v1102_v40 = vsel %vm1070_vm6, %v1069_v8, %v816_v37 }
 0x1d7   : > { %v1135_v48 = vsel %vm1103_vm7, %v1102_v40, %v851_v61 }
 0x1d8   : > { %v1168_v4 = vsel %vm1136_vm8, %v1135_v48, %v888_v25  ;;  %v1467_v48 = vsel %vm1004_vm4, %v2795_v50, 0.0 }
 0x1d9   : > { %v2857_v17 = vpop.f32.mrf.mxu1 }
 0x1da   : > { %v1393_v29 = vpack.c.bf16 %v2857_v17, %v2857_v17  ;;  %v970_v45 = vpop.permute.xlu1 %969 }
 0x1dc   : > { %1426 = vst.msk [vmem:[%s2582_s13 + $0x30] sm:$0xf] %vm1413_vm12, %v1393_v29  ;;  %v2864_v6 = vpop.f32.mrf.mxu0  ;;  %v1469_v29 = vsel %vm1004_vm4, %v2857_v17, 0.0 }
 0x1dd   : > { %v1387_v1 = vpack.c.bf16 %v2864_v6, %v2864_v6  ;;  %v935_v10 = vpop.permute.xlu0 %934  ;;  %v1457_v46 = vsel %vm1004_vm4, %v2864_v6, 0.0 }
 0x1de   : > { %v1201_v12 = vsel %vm1169_vm9, %v1168_v4, %v935_v10  ;;  %v1458_v3 = vadd.f32 %v1457_v46, %v1456_v38 }
 0x1df   : > { %1420 = vst.msk [vmem:[%s2582_s13 + $0x18] sm:$0xf] %vm1413_vm12, %v1387_v1  ;;  %v1234_v52 = vsel %vm1202_vm10, %v1201_v12, %v970_v45 }
 0x1e0   : > { %1888 = vmatmul.msk.bf16.gmra.mxu3 %vm1255_vm11, %v1234_v52 }
 0x1e1   : > { %v2874_v5 = vpop.f32.mrf.mxu1 }
 0x1e2   : > { %v1394_v15 = vpack.c.bf16 %v2874_v5, %v2874_v5  ;;  %v1471_v4 = vsel %vm1004_vm4, %v2874_v5, 0.0 }
 0x1e4   : > { %1427 = vst.msk [vmem:[%s2582_s13 + $0x34] sm:$0xf] %vm1413_vm12, %v1394_v15  ;;  %v2880_v14 = vpop.f32.mrf.mxu0 }
 0x1e5   : > { %v1388_v18 = vpack.c.bf16 %v2880_v14, %v2880_v14  ;;  %v1459_v0 = vsel %vm1004_vm4, %v2880_v14, 0.0 }
 0x1e6   : > { %v1460_v49 = vadd.f32 %v1459_v0, %v1458_v3 }
 0x1e7   : > { %1421 = vst.msk [vmem:[%s2582_s13 + $0x1c] sm:$0xf] %vm1413_vm12, %v1388_v18  ;;  %v1477_v18 = vsel %vm1004_vm4, %v2739_v23, 0.0 }
 0x1e8   : > { %v1462_v28 = vadd.f32 %v1461_v33, %v1460_v49 }
 0x1ea   : > { %v1464_v61 = vadd.f32 %v1463_v57, %v1462_v28  ;;  %v1493_v57 = vsel %vm1004_vm4, %v2818_v26, 0.0 }
 0x1ec   : > { %v1466_v37 = vadd.f32 %v1465_v53, %v1464_v61 }
 0x1ee   : > { %v1468_v25 = vadd.f32 %v1467_v48, %v1466_v37  ;;  %v1495_v37 = vsel %vm1004_vm4, %v2838_v43, 0.0 }
 0x1f0   : > { %v1470_v45 = vadd.f32 %v1469_v29, %v1468_v25 }
 0x1f2   : > { %v1472_v10 = vadd.f32 %v1471_v4, %v1470_v45 }
 0x20f   : > { %v2894_v42 = vpop.f32.mrf.mxu3 }
 0x210   : > { %v1407_v62 = vpack.c.bf16 %v2894_v42, %v2894_v42  ;;  %v1497_v48 = vsel %vm1004_vm4, %v2894_v42, 0.0 }
 0x212   : > { %1440 = vst.msk [vmem:[%s2582_s13 + $0x68] sm:$0xf] %vm1413_vm12, %v1407_v62  ;;  %v2904_v9 = vpop.f32.mrf.mxu2 }
 0x213   : > { %v1401_v27 = vpack.c.bf16 %v2904_v9, %v2904_v9  ;;  %v1485_v63 = vsel %vm1004_vm4, %v2904_v9, 0.0 }
 0x215   : > { %1434 = vst.msk [vmem:[%s2582_s13 + $0x50] sm:$0xf] %vm1413_vm12, %v1401_v27 }
 0x217   : > { %v2914_v36 = vpop.f32.mrf.mxu3 }
 0x218   : > { %v1408_v47 = vpack.c.bf16 %v2914_v36, %v2914_v36  ;;  %v1499_v29 = vsel %vm1004_vm4, %v2914_v36, 0.0 }
 0x21a   : > { %1441 = vst.msk [vmem:[%s2582_s13 + $0x6c] sm:$0xf] %vm1413_vm12, %v1408_v47  ;;  %v2920_v13 = vpop.f32.mrf.mxu2 }
 0x21b   : > { %v1402_v58 = vpack.c.bf16 %v2920_v13, %v2920_v13  ;;  %v1487_v46 = vsel %vm1004_vm4, %v2920_v13, 0.0 }
 0x21d   : > { %1435 = vst.msk [vmem:[%s2582_s13 + $0x54] sm:$0xf] %vm1413_vm12, %v1402_v58  ;;  %v2928_v19 = vpop.f32.mrf.mxu1 }
 0x21e   : > { %v1395_v31 = vpack.c.bf16 %v2928_v19, %v2928_v19  ;;  %v1473_v1 = vsel %vm1004_vm4, %v2928_v19, 0.0 }
 0x21f   : > { %v1474_v52 = vadd.f32 %v1473_v1, %v1472_v10 }
 0x220   : > { %1428 = vst.msk [vmem:[%s2582_s13 + $0x38] sm:$0xf] %vm1413_vm12, %v1395_v31 }
 0x225   : > { %v2938_v8 = vpop.f32.mrf.mxu1 }
 0x226   : > { %v1396_v40 = vpack.c.bf16 %v2938_v8, %v2938_v8  ;;  %v1475_v12 = vsel %vm1004_vm4, %v2938_v8, 0.0 }
 0x227   : > { %v1476_v15 = vadd.f32 %v1475_v12, %v1474_v52  ;;  %v1990_v52 = vmov 256.0  }
 0x228   : > { %1429 = vst.msk [vmem:[%s2582_s13 + $0x3c] sm:$0xf] %vm1413_vm12, %v1396_v40  ;;  %1955 = vrcp.f32 %v1990_v52 }
 0x229   : > { %v1478_v20 = vadd.f32 %v1477_v18, %v1476_v15 }
 0x22b   : > { %v1480_v59 = vadd.f32 %v1479_v60, %v1478_v20 }
 0x22d   : > { %v1482_v39 = vadd.f32 %v1481_v2, %v1480_v59 }
 0x22e   : > { %v1956_v60 = vpop.eup %1955 }
 0x22f   : > { %v1484_v41 = vadd.f32 %v1483_v35, %v1482_v39  ;;  %vm1520_vm13 = vweird.f32 %v1956_v60 }
 0x231   : > { %v1486_v22 = vadd.f32 %v1485_v63, %v1484_v41  ;;  %v1516_v63 = vmul.f32 256.0, %v1956_v60 }
 0x233   : > { %v1488_v3 = vadd.f32 %v1487_v46, %v1486_v22  ;;  %v1517_v46 = vsub.f32 1.0, %v1516_v63 }
 0x247   : > { %v2962_v62 = vpop.f32.mrf.mxu2 }
 0x248   : > { %v1403_v54 = vpack.c.bf16 %v2962_v62, %v2962_v62  ;;  %v1489_v38 = vsel %vm1004_vm4, %v2962_v62, 0.0 }
 0x249   : > { %v1490_v47 = vadd.f32 %v1489_v38, %v1488_v3  ;;  %v1518_v3 = vmul.f32 %v1956_v60, %v1517_v46 }
 0x24a   : > { %1436 = vst.msk [vmem:[%s2582_s13 + $0x58] sm:$0xf] %vm1413_vm12, %v1403_v54 }
 0x24b   : > { %v2970_v27 = vpop.f32.mrf.mxu3 }
 0x24c   : > { %v1409_v0 = vpack.c.bf16 %v2970_v27, %v2970_v27  ;;  %v1501_v1 = vsel %vm1004_vm4, %v2970_v27, 0.0 }
 0x24e   : > { %1442 = vst.msk [vmem:[%s2582_s13 + $0x70] sm:$0xf] %vm1413_vm12, %v1409_v0 }
 0x24f   : > { %v2980_v49 = vpop.f32.mrf.mxu2 }
 0x250   : > { %v1404_v58 = vpack.c.bf16 %v2980_v49, %v2980_v49  ;;  %v1491_v33 = vsel %vm1004_vm4, %v2980_v49, 0.0 }
 0x251   : > { %v1492_v28 = vadd.f32 %v1491_v33, %v1490_v47 }
 0x252   : > { %1437 = vst.msk [vmem:[%s2582_s13 + $0x5c] sm:$0xf] %vm1413_vm12, %v1404_v58  ;;  %v1519_v58 = vadd.f32 %v1956_v60, %v1518_v3 }
 0x253   : > { %v2988_v31 = vpop.f32.mrf.mxu3  ;;  %v1494_v53 = vadd.f32 %v1493_v57, %v1492_v28 }
 0x254   : > { %v1410_v61 = vpack.c.bf16 %v2988_v31, %v2988_v31  ;;  %v1503_v15 = vsel %vm1004_vm4, %v2988_v31, 0.0  ;;  %v1521_v28 = vsel %vm1520_vm13, %v1956_v60, %v1519_v58 }
 0x255   : > { %v1496_v40 = vadd.f32 %v1495_v37, %v1494_v53 }
 0x256   : > { %1443 = vst.msk [vmem:[%s2582_s13 + $0x74] sm:$0xf] %vm1413_vm12, %v1410_v61 }
 0x257   : > { %v1498_v25 = vadd.f32 %v1497_v48, %v1496_v40 }
 0x259   : > { %v1500_v45 = vadd.f32 %v1499_v29, %v1498_v25 }
 0x25b   : > { %v1502_v12 = vadd.f32 %v1501_v1, %v1500_v45 }
 0x25d   : > { %v1504_v20 = vadd.f32 %v1503_v15, %v1502_v12 }
 0x263   : > { %v3002_v4 = vpop.f32.mrf.mxu3 }
 0x264   : > { %v1411_v10 = vpack.c.bf16 %v3002_v4, %v3002_v4  ;;  %v1505_v18 = vsel %vm1004_vm4, %v3002_v4, 0.0 }
 0x265   : > { %v1506_v59 = vadd.f32 %v1505_v18, %v1504_v20 }
 0x266   : > { %1444 = vst.msk [vmem:[%s2582_s13 + $0x78] sm:$0xf] %vm1413_vm12, %v1411_v10 }
 0x26b   : > { %v3014_v2 = vpop.f32.mrf.mxu3 }
 0x26c   : > { %v1412_v39 = vpack.c.bf16 %v3014_v2, %v3014_v2  ;;  %v1507_v35 = vsel %vm1004_vm4, %v3014_v2, 0.0 }
 0x26d   : > { %v1508_v41 = vadd.f32 %v1507_v35, %v1506_v59 }
 0x26e   : > { %1445 = vst.msk [vmem:[%s2582_s13 + $0x7c] sm:$0xf] %vm1413_vm12, %v1412_v39 }
 0x26f   : > { %v1509_v54 = vrot.slane %v1508_v41, 4 }
 0x271   : > { %v1510_v22 = vadd.f32 %v1509_v54, %v1508_v41 }
 0x273   : > { %v1511_v38 = vrot.slane %v1510_v22, 2 }
 0x275   : > { %v1512_v0 = vadd.f32 %v1511_v38, %v1510_v22 }
 0x277   : > { %v1513_v47 = vrot.slane %v1512_v0, 1 }
 0x279   : > { %v1514_v33 = vadd.f32 %v1513_v47, %v1512_v0 }
 0x27b   : > { %v3022_v57 = vmul.f32 %v1521_v28, %v1514_v33 }
 0x27d   : > { %v1523_v61 = vsub.f32 %v2584_v30, %v3022_v57  ;;  %v1524_v53 = vsub.f32 %v2600_v21, %v3022_v57  ;;  %v1525_v37 = vsub.f32 %v2669_v24, %v3022_v57  ;;  %v1526_v40 = vsub.f32 %v2700_v34, %v3022_v57 }
 0x27e   : > { %v1527_v29 = vsub.f32 %v2760_v44, %v3022_v57  ;;  %v1528_v1 = vsub.f32 %v2782_v51, %v3022_v57  ;;  %v1529_v24 = vsub.f32 %v2864_v6, %v3022_v57  ;;  %v1530_v44 = vsub.f32 %v2880_v14, %v3022_v57 }
 0x27f   : > { %v1555_v48 = vmul.f32 %v1523_v61, %v1523_v61  ;;  %v1556_v25 = vmul.f32 %v1524_v53, %v1524_v53  ;;  %v1557_v45 = vmul.f32 %v1525_v37, %v1525_v37  ;;  %v1558_v10 = vmul.f32 %v1526_v40, %v1526_v40 }
 0x280   : > { %v1559_v52 = vmul.f32 %v1527_v29, %v1527_v29  ;;  %v1560_v18 = vmul.f32 %v1528_v1, %v1528_v1  ;;  %v1531_v60 = vsub.f32 %v2661_v55, %v3022_v57  ;;  %v1561_v59 = vmul.f32 %v1529_v24, %v1529_v24 }
 0x281   : > { %v1587_v30 = vsel %vm1004_vm4, %v1555_v48, 0.0  ;;  %v1588_v21 = vsel %vm1004_vm4, %v1556_v25, 0.0  ;;  %v1590_v34 = vsel %vm1004_vm4, %v1557_v45, 0.0  ;;  %v1592_v20 = vsel %vm1004_vm4, %v1558_v10, 0.0 }
 0x282   : > { %v1589_v12 = vadd.f32 %v1588_v21, %v1587_v30  ;;  %v1594_v39 = vsel %vm1004_vm4, %v1559_v52, 0.0  ;;  %v1532_v6 = vsub.f32 %v2687_v32, %v3022_v57  ;;  %v1562_v41 = vmul.f32 %v1530_v44, %v1530_v44 }
 0x283   : > { %v1596_v63 = vsel %vm1004_vm4, %v1560_v18, 0.0  ;;  %v1533_v14 = vsub.f32 %v2776_v11, %v3022_v57  ;;  %v1563_v22 = vmul.f32 %v1531_v60, %v1531_v60  ;;  %v1598_v46 = vsel %vm1004_vm4, %v1561_v59, 0.0 }
 0x284   : > { %v1591_v15 = vadd.f32 %v1590_v34, %v1589_v12  ;;  %v1534_v55 = vsub.f32 %v2795_v50, %v3022_v57  ;;  %v1564_v0 = vmul.f32 %v1532_v6, %v1532_v6  ;;  %v1600_v3 = vsel %vm1004_vm4, %v1562_v41, 0.0 }
 0x285   : > { %v1535_v32 = vsub.f32 %v2857_v17, %v3022_v57  ;;  %v1565_v58 = vmul.f32 %v1533_v14, %v1533_v14  ;;  %v1602_v33 = vsel %vm1004_vm4, %v1563_v22, 0.0  ;;  %v1536_v11 = vsub.f32 %v2874_v5, %v3022_v57 }
 0x286   : > { %v1593_v51 = vadd.f32 %v1592_v20, %v1591_v15  ;;  %v1566_v61 = vmul.f32 %v1534_v55, %v1534_v55  ;;  %v1604_v53 = vsel %vm1004_vm4, %v1564_v0, 0.0  ;;  %v1537_v50 = vsub.f32 %v2928_v19, %v3022_v57 }
 0x287   : > { %v1567_v40 = vmul.f32 %v1535_v32, %v1535_v32  ;;  %v1606_v48 = vsel %vm1004_vm4, %v1565_v58, 0.0  ;;  %v1538_v17 = vsub.f32 %v2938_v8, %v3022_v57  ;;  %v1568_v29 = vmul.f32 %v1536_v11, %v1536_v11 }
 0x288   : > { %v1595_v35 = vadd.f32 %v1594_v39, %v1593_v51  ;;  %v1608_v45 = vsel %vm1004_vm4, %v1566_v61, 0.0  ;;  %v1539_v5 = vsub.f32 %v2739_v23, %v3022_v57  ;;  %v1569_v10 = vmul.f32 %v1537_v50, %v1537_v50 }
 0x289   : > { %v1610_v30 = vsel %vm1004_vm4, %v1567_v40, 0.0  ;;  %v1540_v19 = vsub.f32 %v2745_v7, %v3022_v57  ;;  %v1570_v12 = vmul.f32 %v1538_v17, %v1538_v17  ;;  %v1612_v24 = vsel %vm1004_vm4, %v1568_v29, 0.0 }
 0x28a   : > { %v1597_v54 = vadd.f32 %v1596_v63, %v1595_v35  ;;  %v1541_v8 = vsub.f32 %v2827_v56, %v3022_v57  ;;  %v1571_v34 = vmul.f32 %v1539_v5, %v1539_v5  ;;  %v1614_v15 = vsel %vm1004_vm4, %v1569_v10, 0.0 }
 0x28b   : > { %v1542_v23 = vsub.f32 %v2846_v16, %v3022_v57  ;;  %v1572_v18 = vmul.f32 %v1540_v19, %v1540_v19  ;;  %v1616_v20 = vsel %vm1004_vm4, %v1570_v12, 0.0  ;;  %v1543_v7 = vsub.f32 %v2904_v9, %v3022_v57 }
 0x28c   : > { %v1599_v38 = vadd.f32 %v1598_v46, %v1597_v54  ;;  %v1573_v60 = vmul.f32 %v1541_v8, %v1541_v8  ;;  %v1618_v59 = vsel %vm1004_vm4, %v1571_v34, 0.0  ;;  %v1544_v56 = vsub.f32 %v2920_v13, %v3022_v57 }
 0x28d   : > { %v1574_v35 = vmul.f32 %v1542_v23, %v1542_v23  ;;  %v1620_v6 = vsel %vm1004_vm4, %v1572_v18, 0.0  ;;  %v1545_v16 = vsub.f32 %v2962_v62, %v3022_v57  ;;  %v1575_v63 = vmul.f32 %v1543_v7, %v1543_v7 }
 0x28e   : > { %v1601_v47 = vadd.f32 %v1600_v3, %v1599_v38  ;;  %v1622_v54 = vsel %vm1004_vm4, %v1573_v60, 0.0  ;;  %v1546_v9 = vsub.f32 %v2980_v49, %v3022_v57  ;;  %v1576_v22 = vmul.f32 %v1544_v56, %v1544_v56 }
 0x28f   : > { %v1624_v46 = vsel %vm1004_vm4, %v1574_v35, 0.0  ;;  %v1547_v13 = vsub.f32 %v2818_v26, %v3022_v57  ;;  %v1577_v55 = vmul.f32 %v1545_v16, %v1545_v16  ;;  %v1626_v0 = vsel %vm1004_vm4, %v1575_v63, 0.0 }
 0x290   : > { %v1603_v28 = vadd.f32 %v1602_v33, %v1601_v47  ;;  %v1548_v62 = vsub.f32 %v2838_v43, %v3022_v57  ;;  %v1578_v47 = vmul.f32 %v1546_v9, %v1546_v9  ;;  %v1628_v32 = vsel %vm1004_vm4, %v1576_v22, 0.0 }
 0x291   : > { %v1549_v49 = vsub.f32 %v2894_v42, %v3022_v57  ;;  %v1579_v33 = vmul.f32 %v1547_v13, %v1547_v13  ;;  %v1550_v26 = vsub.f32 %v2914_v36, %v3022_v57  ;;  %v1551_v43 = vsub.f32 %v2970_v27, %v3022_v57 }
 0x292   : > { %v1605_v37 = vadd.f32 %v1604_v53, %v1603_v28  ;;  %v1630_v28 = vsel %vm1004_vm4, %v1577_v55, 0.0  ;;  %v1580_v61 = vmul.f32 %v1548_v62, %v1548_v62  ;;  %v1632_v53 = vsel %vm1004_vm4, %v1578_v47, 0.0 }
 0x293   : > { %v1581_v50 = vmul.f32 %v1549_v49, %v1549_v49  ;;  %v1634_v40 = vsel %vm1004_vm4, %v1579_v33, 0.0  ;;  %v1552_v42 = vsub.f32 %v2988_v31, %v3022_v57  ;;  %v1553_v36 = vsub.f32 %v3002_v4, %v3022_v57 }
 0x294   : > { %v1607_v25 = vadd.f32 %v1606_v48, %v1605_v37  ;;  %v1636_v17 = vsel %vm1004_vm4, %v1580_v61, 0.0  ;;  %v1554_v27 = vsub.f32 %v3014_v2, %v3022_v57 }
 0x295   : > { %v1584_v10 = vmul.f32 %v1552_v42, %v1552_v42  ;;  %v1585_v31 = vmul.f32 %v1553_v36, %v1553_v36 }
 0x296   : > { %v1609_v1 = vadd.f32 %v1608_v45, %v1607_v25  ;;  %v1582_v25 = vmul.f32 %v1550_v26, %v1550_v26  ;;  %v1583_v45 = vmul.f32 %v1551_v43, %v1551_v43 }
 0x297   : > { %v1646_v8 = vsel %vm1004_vm4, %v1585_v31, 0.0 }
 0x298   : > { %v1611_v21 = vadd.f32 %v1610_v30, %v1609_v1  ;;  %v1638_v1 = vsel %vm1004_vm4, %v1581_v50, 0.0  ;;  %v1640_v30 = vsel %vm1004_vm4, %v1582_v25, 0.0  ;;  %v1642_v19 = vsel %vm1004_vm4, %v1583_v45, 0.0 }
 0x29a   : > { %v1613_v52 = vadd.f32 %v1612_v24, %v1611_v21  ;;  %v1586_v24 = vmul.f32 %v1554_v27, %v1554_v27 }
 0x29c   : > { %v1615_v44 = vadd.f32 %v1614_v15, %v1613_v52  ;;  %v1644_v52 = vsel %vm1004_vm4, %v1584_v10, 0.0  ;;  %v1648_v15 = vsel %vm1004_vm4, %v1586_v24, 0.0 }
 0x29e   : > { %v1617_v51 = vadd.f32 %v1616_v20, %v1615_v44 }
 0x2a0   : > { %v1619_v39 = vadd.f32 %v1618_v59, %v1617_v51 }
 0x2a2   : > { %v1621_v41 = vadd.f32 %v1620_v6, %v1619_v39 }
 0x2a4   : > { %v1623_v14 = vadd.f32 %v1622_v54, %v1621_v41 }
 0x2a6   : > { %v1625_v38 = vadd.f32 %v1624_v46, %v1623_v14 }
 0x2a8   : > { %v1627_v3 = vadd.f32 %v1626_v0, %v1625_v38 }
 0x2aa   : > { %v1629_v58 = vadd.f32 %v1628_v32, %v1627_v3 }
 0x2ac   : > { %v1631_v11 = vadd.f32 %v1630_v28, %v1629_v58 }
 0x2ae   : > { %v1633_v37 = vadd.f32 %v1632_v53, %v1631_v11 }
 0x2b0   : > { %v1635_v48 = vadd.f32 %v1634_v40, %v1633_v37 }
 0x2b2   : > { %v1637_v29 = vadd.f32 %v1636_v17, %v1635_v48 }
 0x2b4   : > { %v1639_v5 = vadd.f32 %v1638_v1, %v1637_v29 }
 0x2b6   : > { %v1641_v21 = vadd.f32 %v1640_v30, %v1639_v5 }
 0x2b8   : > { %v1643_v12 = vadd.f32 %v1642_v19, %v1641_v21 }
 0x2ba   : > { %v1645_v4 = vadd.f32 %v1644_v52, %v1643_v12 }
 0x2bc   : > { %v1647_v34 = vadd.f32 %v1646_v8, %v1645_v4 }
 0x2be   : > { %v1649_v44 = vadd.f32 %v1648_v15, %v1647_v34 }
 0x2c0   : > { %v1650_v2 = vrot.slane %v1649_v44, 4 }
 0x2c2   : > { %v1651_v23 = vadd.f32 %v1650_v2, %v1649_v44 }
 0x2c4   : > { %v1652_v18 = vrot.slane %v1651_v23, 2 }
 0x2c6   : > { %v1653_v20 = vadd.f32 %v1652_v18, %v1651_v23 }
 0x2c8   : > { %v1654_v51 = vrot.slane %v1653_v20, 1 }
 0x2ca   : > { %v1655_v7 = vadd.f32 %v1654_v51, %v1653_v20 }
 0x2cc   : > { %v1657_v60 = vsel %vm1656_vm14, %v3022_v57, %v1655_v7 }
 0x2cd   : > { %1659 = vst.msk [vmem:[%s239_s20] sm:$0x3] %vm1658_vm15, %v1657_v60 }
 0x2ce PF: > { %s15_s17 = sadd.s32 1, %s1980_s17   ;;  %s3139_s15 = smov %s1976_s16 }
 0x2cf   : > { %p12_p5 = scmp.ge.s32.totalorder %s15_s17, 4   ;;  %s3140_s16 = smov %s3142_s2 }
 0x2d1   :  { %14 = sbr.rel (!%p12_p5) target bundleno = 2 (0x2), region = 75 }

</bundles_post_ra>
